<compile_context>
chip_gen: v7x
topology: tpu7x:2x2x1
jax: 0.10.0
libtpu: 0.0.40
codegen_flags: <defaults>
</compile_context>

<pallas_src>
import functools

import jax
import jax.numpy as jnp
from jax.experimental import pallas as pl
from jax.experimental.pallas import tpu as pltpu


# ----------------------------------------------------------------------------
# Fused kernel: conv3x3(valid)+ReLU -> fc_1+ReLU -> [action | value] heads
# ----------------------------------------------------------------------------
def _fused_forward_kernel(patches_ref, wc_ref, bc_ref, w1_ref, b1_ref,
                          wh_ref, bh_ref, out_ref, *, B, F, Pp):
    """Shapes (whole batch, single invocation):
      patches_ref: (K, B*Pp)    bf16  im2col patches, column = b*Pp + p
      wc_ref:      (F, K)       bf16  conv weight as matmul LHS
      bc_ref:      (F, 1)       f32   conv bias
      w1_ref:      (F*Pp, N1)   bf16  fc_1 weight, row = f*Pp + p (zero-padded p)
      b1_ref:      (1, N1)      f32   fc_1 bias
      wh_ref:      (N1, NH)     bf16  [action | value | 0] weights
      bh_ref:      (1, NH)      f32   [action | value | 0] bias
      out_ref:     (B, N1+NH)   f32   [feats | action | value | 0] per row
    """
    # ---- conv_1 (3x3, stride 1, valid) for the WHOLE batch: one matmul ----
    # (F, K) @ (K, B*Pp) -> (F, B*Pp), bf16 operands, f32 accumulation.
    h = jnp.dot(wc_ref[...], patches_ref[...],
                preferred_element_type=jnp.float32)
    h = jnp.maximum(h + bc_ref[...], 0.0)                     # f32 bias + ReLU

    # ---- relayout (F, B*Pp) -> (B, F*Pp) (PyTorch NCHW flatten: idx=f*P+p) --
    # Assembled from 128-aligned static slices + concatenate; padded p columns
    # carry relu(bias) garbage but the matching w1 rows are zero.
    rows = []
    for b in range(B):
        segs = [h[f:f + 1, b * Pp:(b + 1) * Pp] for f in range(F)]  # (1, Pp)
        rows.append(jnp.concatenate(segs, axis=1))                  # (1, F*Pp)
    h_flat = jnp.concatenate(rows, axis=0).astype(jnp.bfloat16)     # (B, F*Pp)

    # ---- fc_1 + ReLU: single contraction, M = B, K = F*Pp ----
    feats = jnp.dot(h_flat, w1_ref[...],
                    preferred_element_type=jnp.float32) + b1_ref[...]
    feats = jnp.maximum(feats, 0.0)                           # (B, N1) f32

    # ---- merged action/value heads ----
    heads = jnp.dot(feats.astype(jnp.bfloat16), wh_ref[...],
                    preferred_element_type=jnp.float32) + bh_ref[...]  # (B, NH)

    # ---- single lane-dense output slab: [feats | action | value | 0] ----
    out_ref[...] = jnp.concatenate([feats, heads], axis=1)


# ----------------------------------------------------------------------------
# Wrapper (layout glue + pallas_call)
# ----------------------------------------------------------------------------
def _im2col(x, OH, OW):
    """x: (B, C, H, W) -> (B, C*9, OH*OW) with k = c*9 + di*3 + dj, p = oh*OW+ow."""
    B, C, _, _ = x.shape
    cols = []
    for di in range(3):
        for dj in range(3):
            cols.append(x[:, :, di:di + OH, dj:dj + OW])      # (B, C, OH, OW)
    pt = jnp.stack(cols, axis=2)                              # (B, C, 9, OH, OW)
    return pt.reshape(B, C * 9, OH * OW)


def custom_conv_model_forward(x, params):
    """Returns (action_out, value_out, features) matching the PyTorch model."""
    x = x.astype(jnp.float32)
    B, C, H, W = x.shape
    OH, OW = H - 2, W - 2
    P = OH * OW
    Pp = ((P + 127) // 128) * 128                             # 196 -> 256 (lane-aligned)

    conv_w = params["conv_w"].astype(jnp.float32)             # (F, C, 3, 3)
    conv_b = params["conv_b"].astype(jnp.float32)             # (F,)
    fc1_w = params["fc1_w"].astype(jnp.float32)               # (F*P, N1)
    fc1_b = params["fc1_b"].astype(jnp.float32)               # (N1,)
    act_w = params["act_w"].astype(jnp.float32)               # (N1, A)
    act_b = params["act_b"].astype(jnp.float32)               # (A,)
    val_w = params["val_w"].astype(jnp.float32)               # (N1, 1)
    val_b = params["val_b"].astype(jnp.float32)               # (1,)

    F = conv_w.shape[0]
    K = C * 9                                                  # 36, left unpadded
    N1 = fc1_w.shape[1]
    A = act_w.shape[1]
    # Head width chosen so the packed [feats|heads] output is lane-dense (128).
    if (A + 1) <= 128 - N1:
        NH = 128 - N1
    else:
        NH = ((A + 1 + 127) // 128) * 128
    NOUT = N1 + NH

    # ---- layout glue (tiny, one-time, wrapper-side) ----
    patches = _im2col(x, OH, OW)                               # (B, K, P) f32
    patches = jnp.pad(patches, ((0, 0), (0, 0), (0, Pp - P)))  # pad p -> 256
    patches_t = jnp.transpose(patches, (1, 0, 2)).reshape(K, B * Pp)
    patches_t = patches_t.astype(jnp.bfloat16)                 # (K, B*Pp)

    wc = conv_w.reshape(F, K).astype(jnp.bfloat16)             # (F, K)
    bc = conv_b.reshape(F, 1)                                  # (F, 1) f32

    w1 = fc1_w.reshape(F, P, N1)                               # channel-major blocks
    w1 = jnp.pad(w1, ((0, 0), (0, Pp - P), (0, 0)))            # zero rows for pad p
    w1 = w1.reshape(F * Pp, N1).astype(jnp.bfloat16)           # (F*Pp, N1)
    b1 = fc1_b.reshape(1, N1)                                  # f32

    wh = jnp.concatenate([act_w, val_w], axis=1)               # (N1, A+1)
    wh = jnp.pad(wh, ((0, 0), (0, NH - (A + 1)))).astype(jnp.bfloat16)
    bh = jnp.pad(jnp.concatenate([act_b, val_b], axis=0),
                 ((0, NH - (A + 1)),)).reshape(1, NH)          # (1, NH) f32

    kernel = functools.partial(_fused_forward_kernel, B=B, F=F, Pp=Pp)

    out = pl.pallas_call(
        kernel,
        grid=(1,),
        in_specs=[
            pl.BlockSpec((K, B * Pp), lambda i: (0, 0)),       # patches (bf16)
            pl.BlockSpec((F, K), lambda i: (0, 0)),            # conv weight (bf16)
            pl.BlockSpec((F, 1), lambda i: (0, 0)),            # conv bias (f32)
            pl.BlockSpec((F * Pp, N1), lambda i: (0, 0)),      # fc1 weight (bf16)
            pl.BlockSpec((1, N1), lambda i: (0, 0)),           # fc1 bias (f32)
            pl.BlockSpec((N1, NH), lambda i: (0, 0)),          # head weight (bf16)
            pl.BlockSpec((1, NH), lambda i: (0, 0)),           # head bias (f32)
        ],
        out_specs=pl.BlockSpec((B, NOUT), lambda i: (0, 0)),
        out_shape=jax.ShapeDtypeStruct((B, NOUT), jnp.float32),
        compiler_params=pltpu.CompilerParams(
            dimension_semantics=("arbitrary",)),
    )(patches_t, wc, bc, w1, b1, wh, bh)

    feats = out[:, :N1]
    action_out = out[:, N1:N1 + A]
    value_out = out[:, N1 + A]                                 # value_function(): [-1]
    return action_out, value_out, feats


# ----------------------------------------------------------------------------
# Params + plain-JAX references for verification
# ----------------------------------------------------------------------------
def init_params(key, in_channels, conv_filters, pre_fc_size, fc_size, num_outputs):
    ks = jax.random.split(key, 8)
    scale = 0.05
    return {
        "conv_w": scale * jax.random.normal(ks[0], (conv_filters, in_channels, 3, 3), jnp.float32),
        "conv_b": scale * jax.random.normal(ks[1], (conv_filters,), jnp.float32),
        "fc1_w": scale * jax.random.normal(ks[2], (pre_fc_size, fc_size), jnp.float32),
        "fc1_b": scale * jax.random.normal(ks[3], (fc_size,), jnp.float32),
        "act_w": scale * jax.random.normal(ks[4], (fc_size, num_outputs), jnp.float32),
        "act_b": scale * jax.random.normal(ks[5], (num_outputs,), jnp.float32),
        "val_w": scale * jax.random.normal(ks[6], (fc_size, 1), jnp.float32),
        "val_b": scale * jax.random.normal(ks[7], (1,), jnp.float32),
    }


def _reference_forward(x, params, *, quantized=False):
    """Pure-JAX reference.  quantized=True applies the kernel's bf16 operand
    rounding at the same points (all accumulation stays f32)."""
    hi = jax.lax.Precision.HIGHEST
    f32 = jnp.float32

    def q(a):
        a = a.astype(f32)
        return a.astype(jnp.bfloat16).astype(f32) if quantized else a

    x = q(x)
    h = jax.lax.conv_general_dilated(
        x, q(params["conv_w"]), window_strides=(1, 1), padding="VALID",
        dimension_numbers=("NCHW", "OIHW", "NCHW"), precision=hi)
    h = jax.nn.relu(h + params["conv_b"].astype(f32)[None, :, None, None])
    h = q(h).reshape(h.shape[0], -1)                           # PyTorch NCHW flatten
    feats = jax.nn.relu(jnp.dot(h, q(params["fc1_w"]), precision=hi)
                        + params["fc1_b"].astype(f32))
    fin = q(feats)
    action = jnp.dot(fin, q(params["act_w"]), precision=hi) + params["act_b"].astype(f32)
    value = (jnp.dot(fin, q(params["val_w"]), precision=hi)
             + params["val_b"].astype(f32)).reshape(-1)
    return action, value, feats


if __name__ == "__main__":
    # Small shapes consistent with the module (obs: NCHW).
    B, C, H, W = 2, 4, 16, 16
    conv_filters = 16
    fc_size = 64
    num_outputs = 6
    pre_fc_size = (H - 2) * (W - 2) * conv_filters             # 14*14*16 = 3136

    key = jax.random.PRNGKey(0)
    k_obs, k_params = jax.random.split(key)
    obs = jax.random.normal(k_obs, (B, C, H, W), jnp.float32)
    params = init_params(k_params, C, conv_filters, pre_fc_size, fc_size, num_outputs)

    fwd = jax.jit(custom_conv_model_forward)
    action_out, value_out, feats = fwd(obs, params)
    jax.block_until_ready((action_out, value_out, feats))

    assert action_out.shape == (B, num_outputs)
    assert value_out.shape == (B,)
    assert feats.shape == (B, fc_size)

    # Kernel-correctness check: reference with identical bf16 operand rounding
    # (differences are only f32 summation order).
    qa, qv, qf = _reference_forward(obs, params, quantized=True)
    assert jnp.allclose(action_out, qa, rtol=1e-3, atol=1e-4)
    assert jnp.allclose(value_out, qv, rtol=1e-3, atol=1e-4)
    assert jnp.allclose(feats, qf, rtol=1e-3, atol=1e-4)

    # Model-level check vs the full-f32 reference (tolerance covers the
    # deliberate bf16 operand quantization; accumulation is f32 throughout).
    ra, rv, rf = _reference_forward(obs, params, quantized=False)
    assert jnp.allclose(action_out, ra, rtol=2e-2, atol=5e-3)
    assert jnp.allclose(value_out, rv, rtol=2e-2, atol=5e-3)
    assert jnp.allclose(feats, rf, rtol=2e-2, atol=5e-3)

    print("KERNEL_OK")
</pallas_src>

<mosaic_0001>
module attributes {stable_mosaic.version = 11 : i64} {
  func.func @_fused_forward_kernel(%arg0: i32, %arg1: memref<36x512xbf16, #tpu.memory_space<vmem>>, %arg2: memref<16x36xbf16, #tpu.memory_space<vmem>>, %arg3: memref<16x1xf32, #tpu.memory_space<vmem>>, %arg4: memref<4096x64xbf16, #tpu.memory_space<vmem>>, %arg5: memref<1x64xf32, #tpu.memory_space<vmem>>, %arg6: memref<64x64xbf16, #tpu.memory_space<vmem>>, %arg7: memref<1x64xf32, #tpu.memory_space<vmem>>, %arg8: memref<2x128xf32, #tpu.memory_space<vmem>>) attributes {dimension_semantics = [#tpu.dimension_semantics<arbitrary>], iteration_bounds = array<i64: 1>, scalar_prefetch = 0 : i64, scratch_operands = 0 : i64, tpu.core_type = #tpu.core_type<tc>, window_params = [{pipeline_mode = #tpu.pipeline_mode<synchronous>, transform_indices = @transform_0, window_bounds = array<i64: 36, 512>}, {pipeline_mode = #tpu.pipeline_mode<synchronous>, transform_indices = @transform_1, window_bounds = array<i64: 16, 36>}, {pipeline_mode = #tpu.pipeline_mode<synchronous>, transform_indices = @transform_2, window_bounds = array<i64: 16, 1>}, {pipeline_mode = #tpu.pipeline_mode<synchronous>, transform_indices = @transform_3, window_bounds = array<i64: 4096, 64>}, {pipeline_mode = #tpu.pipeline_mode<synchronous>, transform_indices = @transform_4, window_bounds = array<i64: 1, 64>}, {pipeline_mode = #tpu.pipeline_mode<synchronous>, transform_indices = @transform_5, window_bounds = array<i64: 64, 64>}, {pipeline_mode = #tpu.pipeline_mode<synchronous>, transform_indices = @transform_6, window_bounds = array<i64: 1, 64>}, {pipeline_mode = #tpu.pipeline_mode<synchronous>, transform_indices = @transform_7, window_bounds = array<i64: 2, 128>}]} {
    %c0 = arith.constant 0 : index
    %c0_0 = arith.constant 0 : index
    %0 = vector.load %arg2[%c0, %c0_0] : memref<16x36xbf16, #tpu.memory_space<vmem>>, vector<16x36xbf16>
    %c0_1 = arith.constant 0 : index
    %c0_2 = arith.constant 0 : index
    %1 = vector.load %arg1[%c0_1, %c0_2] : memref<36x512xbf16, #tpu.memory_space<vmem>>, vector<36x512xbf16>
    %cst = arith.constant dense<0.000000e+00> : vector<16x512xf32>
    %2 = tpu.matmul %0, %1, %cst {dimension_numbers = #tpu.dot_dimension_numbers<[1], [0], [0], [1], [0, 0, 1, 1], [], []>} : vector<16x36xbf16>, vector<36x512xbf16>, vector<16x512xf32> -> vector<16x512xf32>
    %c0_3 = arith.constant 0 : index
    %c0_4 = arith.constant 0 : index
    %3 = vector.load %arg3[%c0_3, %c0_4] : memref<16x1xf32, #tpu.memory_space<vmem>>, vector<16x1xf32>
    %4 = vector.broadcast %3 : vector<16x1xf32> to vector<16x512xf32>
    %5 = arith.addf %2, %4 : vector<16x512xf32>
    %cst_5 = arith.constant 0.000000e+00 : f32
    %6 = vector.broadcast %cst_5 : f32 to vector<16x512xf32>
    %7 = arith.maximumf %5, %6 : vector<16x512xf32>
    %8 = vector.extract_strided_slice %7 {offsets = [0, 0], sizes = [1, 256], strides = [1, 1]} : vector<16x512xf32> to vector<1x256xf32>
    %9 = vector.extract_strided_slice %7 {offsets = [1, 0], sizes = [1, 256], strides = [1, 1]} : vector<16x512xf32> to vector<1x256xf32>
    %10 = vector.extract_strided_slice %7 {offsets = [2, 0], sizes = [1, 256], strides = [1, 1]} : vector<16x512xf32> to vector<1x256xf32>
    %11 = vector.extract_strided_slice %7 {offsets = [3, 0], sizes = [1, 256], strides = [1, 1]} : vector<16x512xf32> to vector<1x256xf32>
    %12 = vector.extract_strided_slice %7 {offsets = [4, 0], sizes = [1, 256], strides = [1, 1]} : vector<16x512xf32> to vector<1x256xf32>
    %13 = vector.extract_strided_slice %7 {offsets = [5, 0], sizes = [1, 256], strides = [1, 1]} : vector<16x512xf32> to vector<1x256xf32>
    %14 = vector.extract_strided_slice %7 {offsets = [6, 0], sizes = [1, 256], strides = [1, 1]} : vector<16x512xf32> to vector<1x256xf32>
    %15 = vector.extract_strided_slice %7 {offsets = [7, 0], sizes = [1, 256], strides = [1, 1]} : vector<16x512xf32> to vector<1x256xf32>
    %16 = vector.extract_strided_slice %7 {offsets = [8, 0], sizes = [1, 256], strides = [1, 1]} : vector<16x512xf32> to vector<1x256xf32>
    %17 = vector.extract_strided_slice %7 {offsets = [9, 0], sizes = [1, 256], strides = [1, 1]} : vector<16x512xf32> to vector<1x256xf32>
    %18 = vector.extract_strided_slice %7 {offsets = [10, 0], sizes = [1, 256], strides = [1, 1]} : vector<16x512xf32> to vector<1x256xf32>
    %19 = vector.extract_strided_slice %7 {offsets = [11, 0], sizes = [1, 256], strides = [1, 1]} : vector<16x512xf32> to vector<1x256xf32>
    %20 = vector.extract_strided_slice %7 {offsets = [12, 0], sizes = [1, 256], strides = [1, 1]} : vector<16x512xf32> to vector<1x256xf32>
    %21 = vector.extract_strided_slice %7 {offsets = [13, 0], sizes = [1, 256], strides = [1, 1]} : vector<16x512xf32> to vector<1x256xf32>
    %22 = vector.extract_strided_slice %7 {offsets = [14, 0], sizes = [1, 256], strides = [1, 1]} : vector<16x512xf32> to vector<1x256xf32>
    %23 = vector.extract_strided_slice %7 {offsets = [15, 0], sizes = [1, 256], strides = [1, 1]} : vector<16x512xf32> to vector<1x256xf32>
    %24 = tpu.concatenate %8, %9, %10, %11, %12, %13, %14, %15, %16, %17, %18, %19, %20, %21, %22, %23 in 1 : vector<1x256xf32>, vector<1x256xf32>, vector<1x256xf32>, vector<1x256xf32>, vector<1x256xf32>, vector<1x256xf32>, vector<1x256xf32>, vector<1x256xf32>, vector<1x256xf32>, vector<1x256xf32>, vector<1x256xf32>, vector<1x256xf32>, vector<1x256xf32>, vector<1x256xf32>, vector<1x256xf32>, vector<1x256xf32> -> vector<1x4096xf32>
    %25 = vector.extract_strided_slice %7 {offsets = [0, 256], sizes = [1, 256], strides = [1, 1]} : vector<16x512xf32> to vector<1x256xf32>
    %26 = vector.extract_strided_slice %7 {offsets = [1, 256], sizes = [1, 256], strides = [1, 1]} : vector<16x512xf32> to vector<1x256xf32>
    %27 = vector.extract_strided_slice %7 {offsets = [2, 256], sizes = [1, 256], strides = [1, 1]} : vector<16x512xf32> to vector<1x256xf32>
    %28 = vector.extract_strided_slice %7 {offsets = [3, 256], sizes = [1, 256], strides = [1, 1]} : vector<16x512xf32> to vector<1x256xf32>
    %29 = vector.extract_strided_slice %7 {offsets = [4, 256], sizes = [1, 256], strides = [1, 1]} : vector<16x512xf32> to vector<1x256xf32>
    %30 = vector.extract_strided_slice %7 {offsets = [5, 256], sizes = [1, 256], strides = [1, 1]} : vector<16x512xf32> to vector<1x256xf32>
    %31 = vector.extract_strided_slice %7 {offsets = [6, 256], sizes = [1, 256], strides = [1, 1]} : vector<16x512xf32> to vector<1x256xf32>
    %32 = vector.extract_strided_slice %7 {offsets = [7, 256], sizes = [1, 256], strides = [1, 1]} : vector<16x512xf32> to vector<1x256xf32>
    %33 = vector.extract_strided_slice %7 {offsets = [8, 256], sizes = [1, 256], strides = [1, 1]} : vector<16x512xf32> to vector<1x256xf32>
    %34 = vector.extract_strided_slice %7 {offsets = [9, 256], sizes = [1, 256], strides = [1, 1]} : vector<16x512xf32> to vector<1x256xf32>
    %35 = vector.extract_strided_slice %7 {offsets = [10, 256], sizes = [1, 256], strides = [1, 1]} : vector<16x512xf32> to vector<1x256xf32>
    %36 = vector.extract_strided_slice %7 {offsets = [11, 256], sizes = [1, 256], strides = [1, 1]} : vector<16x512xf32> to vector<1x256xf32>
    %37 = vector.extract_strided_slice %7 {offsets = [12, 256], sizes = [1, 256], strides = [1, 1]} : vector<16x512xf32> to vector<1x256xf32>
    %38 = vector.extract_strided_slice %7 {offsets = [13, 256], sizes = [1, 256], strides = [1, 1]} : vector<16x512xf32> to vector<1x256xf32>
    %39 = vector.extract_strided_slice %7 {offsets = [14, 256], sizes = [1, 256], strides = [1, 1]} : vector<16x512xf32> to vector<1x256xf32>
    %40 = vector.extract_strided_slice %7 {offsets = [15, 256], sizes = [1, 256], strides = [1, 1]} : vector<16x512xf32> to vector<1x256xf32>
    %41 = tpu.concatenate %25, %26, %27, %28, %29, %30, %31, %32, %33, %34, %35, %36, %37, %38, %39, %40 in 1 : vector<1x256xf32>, vector<1x256xf32>, vector<1x256xf32>, vector<1x256xf32>, vector<1x256xf32>, vector<1x256xf32>, vector<1x256xf32>, vector<1x256xf32>, vector<1x256xf32>, vector<1x256xf32>, vector<1x256xf32>, vector<1x256xf32>, vector<1x256xf32>, vector<1x256xf32>, vector<1x256xf32>, vector<1x256xf32> -> vector<1x4096xf32>
    %42 = tpu.concatenate %24, %41 in 0 : vector<1x4096xf32>, vector<1x4096xf32> -> vector<2x4096xf32>
    %43 = arith.truncf %42 : vector<2x4096xf32> to vector<2x4096xbf16>
    %c0_6 = arith.constant 0 : index
    %c0_7 = arith.constant 0 : index
    %44 = vector.load %arg4[%c0_6, %c0_7] : memref<4096x64xbf16, #tpu.memory_space<vmem>>, vector<4096x64xbf16>
    %cst_8 = arith.constant dense<0.000000e+00> : vector<2x64xf32>
    %45 = tpu.matmul %43, %44, %cst_8 {dimension_numbers = #tpu.dot_dimension_numbers<[1], [0], [0], [1], [0, 0, 1, 1], [], []>} : vector<2x4096xbf16>, vector<4096x64xbf16>, vector<2x64xf32> -> vector<2x64xf32>
    %c0_9 = arith.constant 0 : index
    %c0_10 = arith.constant 0 : index
    %46 = vector.load %arg5[%c0_9, %c0_10] : memref<1x64xf32, #tpu.memory_space<vmem>>, vector<1x64xf32>
    %47 = vector.broadcast %46 : vector<1x64xf32> to vector<2x64xf32>
    %48 = arith.addf %45, %47 : vector<2x64xf32>
    %cst_11 = arith.constant 0.000000e+00 : f32
    %49 = vector.broadcast %cst_11 : f32 to vector<2x64xf32>
    %50 = arith.maximumf %48, %49 : vector<2x64xf32>
    %51 = arith.truncf %50 : vector<2x64xf32> to vector<2x64xbf16>
    %c0_12 = arith.constant 0 : index
    %c0_13 = arith.constant 0 : index
    %52 = vector.load %arg6[%c0_12, %c0_13] : memref<64x64xbf16, #tpu.memory_space<vmem>>, vector<64x64xbf16>
    %cst_14 = arith.constant dense<0.000000e+00> : vector<2x64xf32>
    %53 = tpu.matmul %51, %52, %cst_14 {dimension_numbers = #tpu.dot_dimension_numbers<[1], [0], [0], [1], [0, 0, 1, 1], [], []>} : vector<2x64xbf16>, vector<64x64xbf16>, vector<2x64xf32> -> vector<2x64xf32>
    %c0_15 = arith.constant 0 : index
    %c0_16 = arith.constant 0 : index
    %54 = vector.load %arg7[%c0_15, %c0_16] : memref<1x64xf32, #tpu.memory_space<vmem>>, vector<1x64xf32>
    %55 = vector.broadcast %54 : vector<1x64xf32> to vector<2x64xf32>
    %56 = arith.addf %53, %55 : vector<2x64xf32>
    %57 = tpu.concatenate %50, %56 in 1 : vector<2x64xf32>, vector<2x64xf32> -> vector<2x128xf32>
    %c0_17 = arith.constant 0 : index
    %c0_18 = arith.constant 0 : index
    %58 = vector.load %arg8[%c0_17, %c0_18] : memref<2x128xf32, #tpu.memory_space<vmem>>, vector<2x128xf32>
    tpu.vector_store %arg8[%c0_17, %c0_18], %57 {strides = array<i32>} : memref<2x128xf32, #tpu.memory_space<vmem>>, vector<2x128xf32>,
    return
  }
  func.func @transform_0(%arg0: i32) -> (i32, i32) {
    %c0_i32 = arith.constant 0 : i32
    %c0_i32_0 = arith.constant 0 : i32
    %c0_i32_1 = arith.constant 0 : i32
    return %c0_i32, %c0_i32_0 : i32, i32
  }
  func.func @transform_1(%arg0: i32) -> (i32, i32) {
    %c0_i32 = arith.constant 0 : i32
    %c0_i32_0 = arith.constant 0 : i32
    %c0_i32_1 = arith.constant 0 : i32
    return %c0_i32, %c0_i32_0 : i32, i32
  }
  func.func @transform_2(%arg0: i32) -> (i32, i32) {
    %c0_i32 = arith.constant 0 : i32
    %c0_i32_0 = arith.constant 0 : i32
    %c0_i32_1 = arith.constant 0 : i32
    return %c0_i32, %c0_i32_0 : i32, i32
  }
  func.func @transform_3(%arg0: i32) -> (i32, i32) {
    %c0_i32 = arith.constant 0 : i32
    %c0_i32_0 = arith.constant 0 : i32
    %c0_i32_1 = arith.constant 0 : i32
    return %c0_i32, %c0_i32_0 : i32, i32
  }
  func.func @transform_4(%arg0: i32) -> (i32, i32) {
    %c0_i32 = arith.constant 0 : i32
    %c0_i32_0 = arith.constant 0 : i32
    %c0_i32_1 = arith.constant 0 : i32
    return %c0_i32, %c0_i32_0 : i32, i32
  }
  func.func @transform_5(%arg0: i32) -> (i32, i32) {
    %c0_i32 = arith.constant 0 : i32
    %c0_i32_0 = arith.constant 0 : i32
    %c0_i32_1 = arith.constant 0 : i32
    return %c0_i32, %c0_i32_0 : i32, i32
  }
  func.func @transform_6(%arg0: i32) -> (i32, i32) {
    %c0_i32 = arith.constant 0 : i32
    %c0_i32_0 = arith.constant 0 : i32
    %c0_i32_1 = arith.constant 0 : i32
    return %c0_i32, %c0_i32_0 : i32, i32
  }
  func.func @transform_7(%arg0: i32) -> (i32, i32) {
    %c0_i32 = arith.constant 0 : i32
    %c0_i32_0 = arith.constant 0 : i32
    %c0_i32_1 = arith.constant 0 : i32
    return %c0_i32, %c0_i32_0 : i32, i32
  }
}

</mosaic_0001>

<bundles_post_ra>
// kernel: custom_conv_model_forward.1
= control target key start
LH: loop header
LB: loop body
LE: loop exit
PB: predicated region body
PF: predicated region fallthrough
CT: control target
= control target key end

     0   :  { %v4179_v1 = vmov 0   ;;  %vm110_vm0 = vcmask 1041408   ;;  %vm106_vm1 = vcmask 293888   ;;  %vm369_vm2 = vcmask 1040384   ;;  %s4182_s27 = smov 64   ;;  %s5269_s0 = inlined_call_operand.vmem [shape: bf16[36,512], index: 0, kind: input, shape index: {}]   ;;  %s5270_s1 = inlined_call_operand.vmem [shape: bf16[16,36], index: 1, kind: input, shape index: {}]   ;;  %s5271_s2 = inlined_call_operand.vmem [shape: f32[16,1], index: 2, kind: input, shape index: {}]   ;;  %s5272_s3 = inlined_call_operand.vmem [shape: bf16[4096,64], index: 3, kind: input, shape index: {}]   ;;  %s5273_s4 = inlined_call_operand.vmem [shape: f32[1,64], index: 4, kind: input, shape index: {}]   ;;  %s5274_s5 = inlined_call_operand.vmem [shape: bf16[64,64], index: 5, kind: input, shape index: {}]   ;;  %s5275_s6 = inlined_call_operand.vmem [shape: f32[1,64], index: 6, kind: input, shape index: {}]   ;;  %s5276_s7 = inlined_call_operand.vmem [shape: f32[2,128], index: 7, kind: output, shape index: {}]  }
   0x1   :  { %v3902_v0 = vld [vmem:[%s5269_s0 + $0x4] ss:$16 sps:$4 sm:$0xff]   ;;  %155 = vmatprep.mubr.bf16.mxu1 %v4179_v1  ;;  %3901 = vset.pattern.permute.xlu0 %v4179_v1  ;;  %v3904_v2 = vld [vmem:[%s5269_s0] ss:$16 sps:$4 sm:$0xff]   ;;  %v3913_v11 = vld [vmem:[%s5269_s0 + $0xc] ss:$16 sps:$4 sm:$0xff]  }
   0x2   :  { %123 = vmatprep.subr.bf16.mxu1 %v3902_v0  ;;  %v3905_v3 = vld [vmem:[%s5269_s0 + $0x24] ss:$16 sps:$4 sm:$0xff]   ;;  %v3907_v5 = vld [vmem:[%s5269_s0 + $0x20] ss:$16 sps:$4 sm:$0xff]   ;;  %v3911_v12 = vld [vmem:[%s5269_s0 + $0x8] ss:$16 sps:$4 sm:$0xff]  }
   0x3   :  { %v37_v4 = vld [vmem:[%s5269_s0 + $0x40] sm:$0x33]  ;;  %124 = vmatpush1.bf16.msra.mxu1 %v3904_v2  ;;  %v38_v13 = vld [vmem:[%s5269_s0 + $0x48] sm:$0x33]  ;;  %v3929_v25 = vld [vmem:[%s5272_s3 + $0x50] sm:$0xff]   ;;  %vm4181_vm3 = vmmov 0  }
   0x4   :  { %v3233_v6 = vcombine.low %v37_v4, %v37_v4  ;;  %125 = vmatprep.subr.bf16.mxu1 %v3905_v3  ;;  %v3234_v7 = vcombine.high %v37_v4, %v37_v4  ;;  %v39_v9 = vld [vmem:[%s5271_s2] sm:$0xff]  ;;  %v40_v14 = vld [vmem:[%s5271_s2 + $0x8] sm:$0xff]  ;;  %v3235_v19 = vcombine.low %v38_v13, %v38_v13  ;;  %v3236_v22 = vcombine.high %v38_v13, %v38_v13  ;;  %v3927_v29 = vld [vmem:[%s5272_s3 + $0xd0] sm:$0xff]  }
   0x5   :  { %v3910_v10 = vld [vmem:[%s5270_s1] sm:$0xff]   ;;  %43 = vperm.xlu0 %3901, %v39_v9   ;;  %v3916_v17 = vld [vmem:[%s5269_s0 + $0x2c] ss:$16 sps:$4 sm:$0xff]   ;;  %v3914_v18 = vld [vmem:[%s5269_s0 + $0x28] ss:$16 sps:$4 sm:$0xff]   ;;  %vm3170_vm4 = vcmask 523264  }
   0x6   :  { %v112_v8 = vsel %vm110_vm0, %v3233_v6, 0  ;;  %v3921_v15 = vld [vmem:[%s5272_s3 + $0x40] sm:$0xff]   ;;  %v3925_v20 = vld [vmem:[%s5272_s3 + $0x48] sm:$0xff]   ;;  %v118_v23 = vsel %vm110_vm0, %v3235_v19, 0  ;;  %v3928_v30 = vld [vmem:[%s5272_s3 + $0x90] sm:$0xff]  }
   0x7   :  { %126 = vmatpush1.bf16.msra.mxu1 %v3907_v5  ;;  %v3922_v16 = vld [vmem:[%s5272_s3] sm:$0xff]   ;;  %3528 = vmatprep.subr.bf16.mxu0 %v3921_v15  ;;  %v3926_v21 = vld [vmem:[%s5272_s3 + $0x8] sm:$0xff]   ;;  %v3930_v31 = vld [vmem:[%s5272_s3 + $0x10] sm:$0xff]  }
   0x8   :  { %3237 = vmatprep.subr.msk.bf16.mxu1 %vm110_vm0, %v3234_v7  ;;  %3529 = vmatpush3.bf16.msra.mxu0 %v3922_v16  ;;  %v3919_v24 = vld [vmem:[%s5272_s3 + $0xc0] sm:$0xff]   ;;  %v3923_v27 = vld [vmem:[%s5272_s3 + $0xc8] sm:$0xff]   ;;  %v3931_v32 = vld [vmem:[%s5272_s3 + $0xd8] sm:$0xff]  }
   0x9   :  { %48 = vperm.xlu0 %3901, %v40_v14   ;;  %3530 = vmatprep.subr.bf16.mxu0 %v3925_v20  ;;  %v3920_v26 = vld [vmem:[%s5272_s3 + $0x80] sm:$0xff]   ;;  %v3924_v28 = vld [vmem:[%s5272_s3 + $0x88] sm:$0xff]   ;;  %v3932_v33 = vld [vmem:[%s5272_s3 + $0x98] sm:$0xff]  }
   0xa   :  { %v3933_v34 = vld [vmem:[%s5272_s3 + $0x58] sm:$0xff]   ;;  %v3935_v36 = vld [vmem:[%s5272_s3 + $0xe0] sm:$0xff]   ;;  %v3939_v40 = vld [vmem:[%s5272_s3 + $0xe8] sm:$0xff]  }
   0xb   :  { %128 = vmatpush1.bf16.msra.mxu1 %v112_v8  ;;  %v3934_v35 = vld [vmem:[%s5272_s3 + $0x18] sm:$0xff]   ;;  %v3936_v37 = vld [vmem:[%s5272_s3 + $0xa0] sm:$0xff]   ;;  %v3940_v41 = vld [vmem:[%s5272_s3 + $0xa8] sm:$0xff]  }
   0xc   :  { %166 = vmatprep.subr.bf16.mxu1 %v3913_v11  ;;  %3531 = vmatpush3.bf16.msra.mxu0 %v3926_v21  ;;  %v3937_v38 = vld [vmem:[%s5272_s3 + $0x60] sm:$0xff]   ;;  %v3941_v42 = vld [vmem:[%s5272_s3 + $0x68] sm:$0xff]   ;;  %v3943_v44 = vld [vmem:[%s5272_s3 + $0xf0] sm:$0xff]  }
   0xd   :  { %3532 = vmatprep.subr.bf16.mxu0 %v3929_v25  ;;  %v3938_v39 = vld [vmem:[%s5272_s3 + $0x20] sm:$0xff]   ;;  %v3942_v43 = vld [vmem:[%s5272_s3 + $0x28] sm:$0xff]   ;;  %v3944_v45 = vld [vmem:[%s5272_s3 + $0xb0] sm:$0xff]  }
   0xe   :  { %3238 = vmatmul.mubr.msk.bf16.vlgmr.msra.gmra.mrb[0].mxu1 %vm106_vm1, %v3910_v10  ;;  %v3945_v46 = vld [vmem:[%s5272_s3 + $0x70] sm:$0xff]   ;;  %v3947_v48 = vld [vmem:[%s5272_s3 + $0xf8] sm:$0xff]   ;;  %v3951_v52 = vld [vmem:[%s5272_s3 + $0x1c0] sm:$0xff]  }
   0xf   :  { %167 = vmatpush1.bf16.msra.mxu1 %v3911_v12  ;;  %198 = vmatprep.mubr.bf16.mxu1 %v4179_v1  ;;  %v3946_v47 = vld [vmem:[%s5272_s3 + $0x30] sm:$0xff]   ;;  %v3948_v49 = vld [vmem:[%s5272_s3 + $0xb8] sm:$0xff]   ;;  %v3953_v53 = vld [vmem:[%s5272_s3 + $0x140] sm:$0xff]  }
  0x10   :  { %168 = vmatprep.subr.bf16.mxu1 %v3916_v17  ;;  %3533 = vmatpush3.bf16.msra.mxu0 %v3930_v31  ;;  %v3949_v50 = vld [vmem:[%s5272_s3 + $0x78] sm:$0xff]  }
  0x11   :  { %3534 = vmatprep.subr.bf16.mxu0 %v3933_v34  ;;  %v3950_v51 = vld [vmem:[%s5272_s3 + $0x38] sm:$0xff]  }
  0x13   :  { %169 = vmatpush1.bf16.msra.mxu1 %v3914_v18 }
  0x14   :  { %3239 = vmatprep.subr.msk.bf16.mxu1 %vm110_vm0, %v3236_v22  ;;  %3535 = vmatpush3.bf16.msra.mxu0 %v3934_v35  ;;  %v3952_v35 = vld [vmem:[%s5272_s3 + $0x180] sm:$0xff]  }
  0x15   :  { %3536 = vmatprep.subr.bf16.mxu0 %v3937_v38 }
  0x17   :  { %171 = vmatpush1.bf16.msra.mxu1 %v118_v23 }
  0x18   :  { %3550 = vmatprep.subr.bf16.mxu1 %v3919_v24  ;;  %3537 = vmatpush3.bf16.msra.mxu0 %v3938_v39 }
  0x19   :  { %3538 = vmatprep.subr.bf16.mxu0 %v3941_v42 }
  0x1a   :  { %3240 = vmatmul.mubr.msk.bf16.vlgmr.msra.gmra.mrb[4].mxu1 %vm106_vm1, %v3910_v10 }
  0x1b   :  { %3551 = vmatpush3.bf16.msra.mxu1 %v3920_v26 }
  0x1c   :  { %3552 = vmatprep.subr.bf16.mxu1 %v3923_v27  ;;  %3539 = vmatpush3.bf16.msra.mxu0 %v3942_v43 }
  0x1d   :  { %3540 = vmatprep.subr.bf16.mxu0 %v3945_v46 }
  0x1f   :  { %3553 = vmatpush3.bf16.msra.mxu1 %v3924_v28 }
  0x20   :  { %3554 = vmatprep.subr.bf16.mxu1 %v3927_v29  ;;  %3541 = vmatpush3.bf16.msra.mxu0 %v3946_v47 }
  0x21   :  { %3542 = vmatprep.subr.bf16.mxu0 %v3949_v50  ;;  %v3955_v50 = vld [vmem:[%s5272_s3 + $0x1c8] sm:$0xff]  }
  0x23   :  { %3555 = vmatpush3.bf16.msra.mxu1 %v3928_v30 }
  0x24   :  { %3556 = vmatprep.subr.bf16.mxu1 %v3931_v32  ;;  %3543 = vmatpush3.bf16.msra.mxu0 %v3950_v51  ;;  %v3957_v51 = vld [vmem:[%s5272_s3 + $0x148] sm:$0xff]  }
  0x25   :  { %3572 = vmatprep.subr.bf16.mxu0 %v3953_v53 }
  0x27   :  { %3557 = vmatpush3.bf16.msra.mxu1 %v3932_v33 }
  0x28   :  { %3558 = vmatprep.subr.bf16.mxu1 %v3935_v36 }
  0x2b   :  { %3559 = vmatpush3.bf16.msra.mxu1 %v3936_v37 }
  0x2c   :  { %3560 = vmatprep.subr.bf16.mxu1 %v3939_v40 }
  0x2f   :  { %3561 = vmatpush3.bf16.msra.mxu1 %v3940_v41 }
  0x30   :  { %3562 = vmatprep.subr.bf16.mxu1 %v3943_v44  ;;  %v3954_v44 = vld [vmem:[%s5272_s3 + $0x100] sm:$0xff]  }
  0x33   :  { %3563 = vmatpush3.bf16.msra.mxu1 %v3944_v45 }
  0x34   :  { %3564 = vmatprep.subr.bf16.mxu1 %v3947_v48 }
  0x37   :  { %3565 = vmatpush3.bf16.msra.mxu1 %v3948_v49 }
  0x38   :  { %3594 = vmatprep.subr.bf16.mxu1 %v3951_v52 }
  0x84   :  { %v44_v54 = vpop.permute.xlu0 %43 }
  0x88   :  { %v49_v61 = vpop.permute.xlu0 %48 }
  0xe1   :  { %v157_v55 = vpop.f32.mrb[0].mxu1 }
  0xe2   :  { %v159_v56 = vpop.f32.mrb[1].mxu1  ;;  %v158_v59 = vadd.f32 %v157_v55, %v44_v54 }
  0xe3   :  { %v161_v57 = vpop.f32.mrb[2].mxu1  ;;  %v160_v60 = vadd.f32 %v159_v56, %v44_v54 }
  0xe4   :  { %v163_v58 = vpop.f32.mrb[3].mxu1  ;;  %v4370_v62 = vmax.f32 %v158_v59, 0.0  ;;  %v162_v63 = vadd.f32 %v161_v57, %v49_v61 }
  0xe5   :  { %v4372_v0 = vmax.f32 %v160_v60, 0.0  ;;  %v164_v1 = vadd.f32 %v163_v58, %v49_v61  ;;  %v3959_v58 = vld [vmem:[%s5272_s3 + $0x1d0] sm:$0xff]  }
  0xe6   :  { %v4374_v2 = vmax.f32 %v162_v63, 0.0  ;;  %v219_v4 = vrot.slane %v4370_v62, 1  ;;  %v227_v5 = vrot.slane %v4370_v62, 3  ;;  %v223_v10 = vrot.slane %v4370_v62, 2 }
  0xe7   :  { %v4378_v6 = vmax.f32 %v164_v1, 0.0  ;;  %v220_v9 = vrot.slane %v4372_v0, 1  ;;  %v228_v13 = vrot.slane %v4372_v0, 3  ;;  %v224_v14 = vrot.slane %v4372_v0, 2  ;;  %v3958_v1 = vld [vmem:[%s5272_s3 + $0x108] sm:$0xff]  }
  0xe8   :  { %v236_v15 = vrot.slane %v4372_v0, 5  ;;  %v232_v18 = vrot.slane %v4372_v0, 4  ;;  %v235_v19 = vrot.slane %v4370_v62, 5  ;;  %v244_v20 = vrot.slane %v4372_v0, 7 }
  0xe9   :  { %v231_v23 = vrot.slane %v4370_v62, 4  ;;  %v240_v24 = vrot.slane %v4372_v0, 6  ;;  %v243_v28 = vrot.slane %v4370_v62, 7  ;;  %v250_v63 = vrot.slane %v4378_v6, 1 }
  0xed   :  { %v200_v3 = vpop.f32.mrb[4].mxu1 }
  0xee   :  { %v201_v7 = vadd.f32 %v200_v3, %v44_v54  ;;  %v202_v8 = vpop.f32.mrb[5].mxu1 }
  0xef   :  { %v203_v11 = vadd.f32 %v202_v8, %v44_v54  ;;  %v204_v12 = vpop.f32.mrb[6].mxu1  ;;  %v3956_v54 = vld [vmem:[%s5272_s3 + $0x188] sm:$0xff]   ;;  %v239_v8 = vrot.slane %v4370_v62, 6 }
  0xf0   :  { %v4385_v16 = vmax.f32 %v201_v7, 0.0  ;;  %v206_v17 = vpop.f32.mrb[7].mxu1  ;;  %v205_v29 = vadd.f32 %v204_v12, %v49_v61  ;;  %v3961_v7 = vld [vmem:[%s5272_s3 + $0x150] sm:$0xff]  }
  0xf1   :  { %v4390_v21 = vmax.f32 %v203_v11, 0.0  ;;  %v207_v22 = vadd.f32 %v206_v17, %v49_v61  ;;  %v3960_v11 = vld [vmem:[%s5272_s3 + $0x190] sm:$0xff]   ;;  %v254_v17 = vrot.slane %v4378_v6, 2 }
  0xf2   :  { %v372_v25 = vsel %vm369_vm2, %v219_v4, %v4385_v16  ;;  %v291_v26 = vrot.slane %v4385_v16, 7  ;;  %v3245_v27 = vrot.slane %v4385_v16, 10  ;;  %v3243_v52 = vrot.slane %v4385_v16, 9 }
  0xf3   :  { %v4399_v30 = vmax.f32 %v207_v22, 0.0  ;;  %v373_v31 = vsel %vm369_vm2, %v220_v9, %v4390_v21  ;;  %v292_v32 = vrot.slane %v4390_v21, 7  ;;  %v404_v34 = vpack.c.bf16 %v372_v25, %v372_v25 }
  0xf4   :  { %v405_v33 = vpack.c.bf16 %v373_v31, %v373_v31  ;;  %v3246_v36 = vrot.slane %v4390_v21, 10  ;;  %v370_v37 = vsel %vm369_vm2, %v4370_v62, %v291_v26  ;;  %v321_v40 = vrot.slane %v291_v26, 7 }
  0xf5   :  { %v322_v38 = vrot.slane %v292_v32, 7  ;;  %v371_v39 = vsel %vm369_vm2, %v4372_v0, %v292_v32  ;;  %v3244_v41 = vrot.slane %v4390_v21, 9  ;;  %v4418_v45 = vsel %vm369_vm2, %v227_v5, %v3245_v27 }
  0xf6   :  { %2561 = vmatprep.mubr.bf16.mxu1 %v405_v33  ;;  %v403_v42 = vpack.c.bf16 %v371_v39, %v371_v39  ;;  %v377_v43 = vsel %vm369_vm2, %v228_v13, %v3246_v36  ;;  %v3250_v46 = vrot.slane %v4390_v21, 12  ;;  %v402_v48 = vpack.c.bf16 %v370_v37, %v370_v37  ;;  %v3966_v39 = vld [vmem:[%s5272_s3 + $0x118] sm:$0xff]  }
  0xf7   :  { %2562 = vmatmul.mubr.bf16.vlgmr.msra.gmra.mrb[8].mxu1 %v404_v34  ;;  %v409_v47 = vpack.c.bf16 %v377_v43, %v377_v43  ;;  %v375_v49 = vsel %vm369_vm2, %v224_v14, %v3244_v41  ;;  %v3248_v56 = vrot.slane %v4390_v21, 11  ;;  %v3249_v57 = vrot.slane %v4385_v16, 12  ;;  %v3967_v34 = vld [vmem:[%s5272_s3 + $0x1e0] sm:$0xff]  }
  0xf8   :  { %3595 = vmatpush3.bf16.msra.mxu1 %v3952_v35  ;;  %2521 = vmatprep.mubr.bf16.mxu0 %v403_v42  ;;  %v407_v53 = vpack.c.bf16 %v375_v49, %v375_v49  ;;  %v4433_v55 = vsel %vm369_vm2, %v236_v15, %v3250_v46  ;;  %v4441_v59 = vsel %vm369_vm2, %v223_v10, %v3243_v52  ;;  %v3247_v61 = vrot.slane %v4385_v16, 11  ;;  %v3963_v15 = vld [vmem:[%s5272_s3 + $0x1d8] sm:$0xff]  }
  0xf9   :  { %2641 = vmatprep.mubr.bf16.mxu1 %v409_v47  ;;  %2522 = vmatmul.mubr.bf16.vlgmr.msra.gmra.mrb[0].mxu0 %v402_v48  ;;  %v4444_v60 = vsel %vm369_vm2, %v244_v20, %v322_v38  ;;  %v4448_v0 = vmax.f32 %v205_v29, 0.0  ;;  %v4454_v3 = vsel %vm369_vm2, %v232_v18, %v3248_v56  ;;  %v4457_v4 = vsel %vm369_vm2, %v235_v19, %v3249_v57  ;;  %v3962_v18 = vld [vmem:[%s5272_s3 + $0x110] sm:$0xff]   ;;  %v3971_v56 = vld [vmem:[%s5272_s3 + $0x1e8] sm:$0xff]  }
  0xfa   :  { %3573 = vmatpush3.bf16.msra.mxu0 %v3954_v44  ;;  %2601 = vmatprep.mubr.bf16.mxu0 %v407_v53  ;;  %v3252_v5 = vrot.slane %v4390_v21, 13  ;;  %v3251_v9 = vrot.slane %v4385_v16, 13  ;;  %v249_v10 = vrot.slane %v4374_v2, 1  ;;  %v4470_v12 = vsel %vm369_vm2, %v231_v23, %v3247_v61  ;;  %v3965_v23 = vld [vmem:[%s5272_s3 + $0x158] sm:$0xff]   ;;  %v3969_v44 = vld [vmem:[%s5272_s3 + $0x160] sm:$0xff]  }
  0xfb   :  { %3596 = vmatprep.subr.bf16.mxu1 %v3955_v50  ;;  %3574 = vmatprep.subr.bf16.mxu0 %v3957_v51  ;;  %v4476_v14 = vsel %vm369_vm2, %v243_v28, %v321_v40  ;;  %v4480_v62 = vsel %vm369_vm2, %v250_v63, %v4399_v30  ;;  %v258_v16 = vrot.slane %v4378_v6, 3  ;;  %v308_v20 = vrot.slane %v4399_v30, 7  ;;  %v3964_v28 = vld [vmem:[%s5272_s3 + $0x198] sm:$0xff]   ;;  %v3968_v50 = vld [vmem:[%s5272_s3 + $0x1a0] sm:$0xff]  }
  0xfc   :  { %3597 = vmatpush3.bf16.msra.mxu1 %v3956_v54  ;;  %v4473_v13 = vsel %vm369_vm2, %v240_v24, %v3252_v5  ;;  %v4491_v19 = vsel %vm369_vm2, %v239_v8, %v3251_v9  ;;  %v4496_v21 = vsel %vm369_vm2, %v249_v10, %v4448_v0  ;;  %v3258_v22 = vrot.slane %v4399_v30, 10  ;;  %v3970_v63 = vld [vmem:[%s5272_s3 + $0x120] sm:$0xff]   ;;  %v3972_v10 = vld [vmem:[%s5272_s3 + $0x1a8] sm:$0xff]  }
  0xfd   :  { %3598 = vmatprep.subr.bf16.mxu1 %v3959_v58  ;;  %v307_v24 = vrot.slane %v4448_v0, 7  ;;  %v3256_v25 = vrot.slane %v4399_v30, 9  ;;  %v257_v26 = vrot.slane %v4374_v2, 3  ;;  %v266_v27 = vrot.slane %v4378_v6, 5 }
  0xfe   :  { %3575 = vmatpush3.bf16.msra.mxu0 %v3958_v1  ;;  %v4511_v29 = vsel %vm369_vm2, %v4378_v6, %v308_v20  ;;  %v4514_v31 = vsel %vm369_vm2, %v258_v16, %v3258_v22  ;;  %v3257_v32 = vrot.slane %v4448_v0, 10  ;;  %v3262_v33 = vrot.slane %v4399_v30, 12  ;;  %v3974_v16 = vld [vmem:[%s5272_s3 + $0x128] sm:$0xff]   ;;  %v3978_v22 = vld [vmem:[%s5272_s3 + $0x130] sm:$0xff]  }
  0xff   :  { %3576 = vmatprep.subr.bf16.mxu0 %v3961_v7  ;;  %v4523_v35 = vsel %vm369_vm2, %v4374_v2, %v307_v24  ;;  %v4526_v36 = vsel %vm369_vm2, %v254_v17, %v3256_v25  ;;  %v253_v37 = vrot.slane %v4374_v2, 2  ;;  %v262_v38 = vrot.slane %v4378_v6, 4  ;;  %v3977_v17 = vld [vmem:[%s5272_s3 + $0x170] sm:$0xff]   ;;  %v3983_v25 = vld [vmem:[%s5272_s3 + $0x2c0] sm:$0xff]  }
 0x100   :  { %3599 = vmatpush3.bf16.msra.mxu1 %v3960_v11  ;;  %v4534_v40 = vsel %vm369_vm2, %v257_v26, %v3257_v32  ;;  %v4537_v41 = vsel %vm369_vm2, %v266_v27, %v3262_v33  ;;  %v265_v42 = vrot.slane %v4374_v2, 5  ;;  %v274_v43 = vrot.slane %v4378_v6, 7  ;;  %v3982_v26 = vld [vmem:[%s5272_s3 + $0x138] sm:$0xff]   ;;  %v3985_v27 = vld [vmem:[%s5272_s3 + $0x240] sm:$0xff]   ;;  %v3987_v33 = vld [vmem:[%s5272_s3 + $0x2c8] sm:$0xff]  }
 0x101   :  { %3600 = vmatprep.subr.bf16.mxu1 %v3963_v15  ;;  %v3255_v46 = vrot.slane %v4448_v0, 9  ;;  %v3260_v47 = vrot.slane %v4399_v30, 11  ;;  %v261_v48 = vrot.slane %v4374_v2, 4  ;;  %v270_v49 = vrot.slane %v4378_v6, 6  ;;  %v3975_v15 = vld [vmem:[%s5272_s3 + $0x1f0] sm:$0xff]  }
 0x102   :  { %3577 = vmatpush3.bf16.msra.mxu0 %v3962_v18  ;;  %v3261_v51 = vrot.slane %v4448_v0, 12  ;;  %v336_v52 = vrot.slane %v308_v20, 7  ;;  %v3259_v53 = vrot.slane %v4448_v0, 11  ;;  %v3264_v54 = vrot.slane %v4399_v30, 13  ;;  %v3976_v18 = vld [vmem:[%s5272_s3 + $0x1b0] sm:$0xff]   ;;  %v3979_v20 = vld [vmem:[%s5272_s3 + $0x1f8] sm:$0xff]  }
 0x103   :  { %3578 = vmatprep.subr.bf16.mxu0 %v3965_v23  ;;  %v4558_v57 = vsel %vm369_vm2, %v253_v37, %v3255_v46  ;;  %v4561_v6 = vsel %vm369_vm2, %v262_v38, %v3260_v47  ;;  %v335_v58 = vrot.slane %v307_v24, 7  ;;  %v3263_v61 = vrot.slane %v4448_v0, 13  ;;  %v3973_v0 = vld [vmem:[%s5272_s3 + $0x168] sm:$0xff]   ;;  %v3981_v23 = vld [vmem:[%s5272_s3 + $0x178] sm:$0xff]   ;;  %v3986_v37 = vld [vmem:[%s5272_s3 + $0x200] sm:$0xff]  }
 0x104   :  { %3601 = vmatpush3.bf16.msra.mxu1 %v3964_v28  ;;  %v4568_v30 = vsel %vm369_vm2, %v265_v42, %v3261_v51  ;;  %v4571_v1 = vsel %vm369_vm2, %v274_v43, %v336_v52  ;;  %v273_v5 = vrot.slane %v4374_v2, 7  ;;  %v269_v7 = vrot.slane %v4374_v2, 6  ;;  %v3980_v24 = vld [vmem:[%s5272_s3 + $0x1b8] sm:$0xff]   ;;  %v3984_v28 = vld [vmem:[%s5272_s3 + $0x280] sm:$0xff]   ;;  %v3990_v42 = vld [vmem:[%s5272_s3 + $0x208] sm:$0xff]  }
 0x105   :  { %3602 = vmatprep.subr.bf16.mxu1 %v3967_v34  ;;  %v4579_v8 = vsel %vm369_vm2, %v261_v48, %v3259_v53  ;;  %v4582_v9 = vsel %vm369_vm2, %v270_v49, %v3264_v54  ;;  %v408_v32 = vpack.c.bf16 %v4418_v45, %v4418_v45  ;;  %v413_v34 = vpack.c.bf16 %v4433_v55, %v4433_v55  ;;  %v3989_v45 = vld [vmem:[%s5272_s3 + $0x248] sm:$0xff]   ;;  %v3992_v43 = vld [vmem:[%s5272_s3 + $0x290] sm:$0xff]   ;;  %v3997_v47 = vld [vmem:[%s5272_s3 + $0x258] sm:$0xff]  }
 0x106   :  { %3579 = vmatpush3.bf16.msra.mxu0 %v3966_v39  ;;  %v4588_v11 = vsel %vm369_vm2, %v273_v5, %v335_v58  ;;  %v4591_v2 = vsel %vm369_vm2, %v269_v7, %v3263_v61  ;;  %v406_v38 = vpack.c.bf16 %v4441_v59, %v4441_v59  ;;  %v411_v39 = vpack.c.bf16 %v4454_v3, %v4454_v3  ;;  %v3988_v55 = vld [vmem:[%s5272_s3 + $0x288] sm:$0xff]   ;;  %v3991_v59 = vld [vmem:[%s5272_s3 + $0x2d0] sm:$0xff]   ;;  %v3996_v48 = vld [vmem:[%s5272_s3 + $0x298] sm:$0xff]  }
 0x107   :  { %3580 = vmatprep.subr.bf16.mxu0 %v3969_v44  ;;  %v3993_v3 = vld [vmem:[%s5272_s3 + $0x250] sm:$0xff]   ;;  %v3995_v44 = vld [vmem:[%s5272_s3 + $0x2d8] sm:$0xff]   ;;  %v3999_v49 = vld [vmem:[%s5272_s3 + $0x2e0] sm:$0xff]  }
 0x108   :  { %3603 = vmatpush3.bf16.msra.mxu1 %v3968_v50  ;;  %v3994_v46 = vld [vmem:[%s5272_s3 + $0x210] sm:$0xff]   ;;  %v3998_v50 = vld [vmem:[%s5272_s3 + $0x218] sm:$0xff]   ;;  %v4001_v51 = vld [vmem:[%s5272_s3 + $0x260] sm:$0xff]  }
 0x109   :  { %3604 = vmatprep.subr.bf16.mxu1 %v3971_v56  ;;  %v4000_v52 = vld [vmem:[%s5272_s3 + $0x2a0] sm:$0xff]   ;;  %v4003_v53 = vld [vmem:[%s5272_s3 + $0x2e8] sm:$0xff]   ;;  %v4007_v61 = vld [vmem:[%s5272_s3 + $0x2f0] sm:$0xff]  }
 0x10a   :  { %3581 = vmatpush3.bf16.msra.mxu0 %v3970_v63  ;;  %v4002_v54 = vld [vmem:[%s5272_s3 + $0x220] sm:$0xff]   ;;  %v4005_v56 = vld [vmem:[%s5272_s3 + $0x268] sm:$0xff]   ;;  %v4009_v5 = vld [vmem:[%s5272_s3 + $0x270] sm:$0xff]  }
 0x10b   :  { %3582 = vmatprep.subr.bf16.mxu0 %v3973_v0  ;;  %v4004_v58 = vld [vmem:[%s5272_s3 + $0x2a8] sm:$0xff]   ;;  %v4008_v7 = vld [vmem:[%s5272_s3 + $0x2b0] sm:$0xff]   ;;  %v4011_v0 = vld [vmem:[%s5272_s3 + $0x2f8] sm:$0xff]  }
 0x10c   :  { %3605 = vmatpush3.bf16.msra.mxu1 %v3972_v10  ;;  %v4006_v63 = vld [vmem:[%s5272_s3 + $0x228] sm:$0xff]   ;;  %v4010_v10 = vld [vmem:[%s5272_s3 + $0x230] sm:$0xff]  }
 0x10d   :  { %3606 = vmatprep.subr.bf16.mxu1 %v3975_v15  ;;  %v4013_v15 = vld [vmem:[%s5272_s3 + $0x278] sm:$0xff]  }
 0x10e   :  { %3583 = vmatpush3.bf16.msra.mxu0 %v3974_v16  ;;  %v4012_v16 = vld [vmem:[%s5272_s3 + $0x2b8] sm:$0xff]  }
 0x10f   :  { %3584 = vmatprep.subr.bf16.mxu0 %v3977_v17  ;;  %v4015_v17 = vld [vmem:[%s5272_s3 + $0x3c0] sm:$0xff]  }
 0x110   :  { %3607 = vmatpush3.bf16.msra.mxu1 %v3976_v18  ;;  %v4014_v18 = vld [vmem:[%s5272_s3 + $0x238] sm:$0xff]  }
 0x111   :  { %3608 = vmatprep.subr.bf16.mxu1 %v3979_v20  ;;  %v4017_v20 = vld [vmem:[%s5272_s3 + $0x340] sm:$0xff]  }
 0x112   :  { %3585 = vmatpush3.bf16.msra.mxu0 %v3978_v22  ;;  %v4016_v22 = vld [vmem:[%s5272_s3 + $0x380] sm:$0xff]  }
 0x113   :  { %3586 = vmatprep.subr.bf16.mxu0 %v3981_v23  ;;  %v412_v23 = vpack.c.bf16 %v4457_v4, %v4457_v4  ;;  %v4021_v4 = vld [vmem:[%s5272_s3 + $0x348] sm:$0xff]  }
 0x114   :  { %3609 = vmatpush3.bf16.msra.mxu1 %v3980_v24  ;;  %v4019_v24 = vld [vmem:[%s5272_s3 + $0x3c8] sm:$0xff]  }
 0x115   :  { %3638 = vmatprep.subr.bf16.mxu1 %v3983_v25  ;;  %v417_v25 = vpack.c.bf16 %v4444_v60, %v4444_v60  ;;  %v4020_v60 = vld [vmem:[%s5272_s3 + $0x388] sm:$0xff]  }
 0x116   :  { %3587 = vmatpush3.bf16.msra.mxu0 %v3982_v26  ;;  %v4018_v26 = vld [vmem:[%s5272_s3 + $0x300] sm:$0xff]  }
 0x117   :  { %2642 = vmatmul.mubr.bf16.vlgmr.msra.gmra.mrb[12].mxu1 %v408_v32  ;;  %3616 = vmatprep.subr.bf16.mxu0 %v3985_v27  ;;  %v410_v27 = vpack.c.bf16 %v4470_v12, %v4470_v12  ;;  %v4023_v12 = vld [vmem:[%s5272_s3 + $0x3d0] sm:$0xff]   ;;  %v4022_v32 = vld [vmem:[%s5272_s3 + $0x308] sm:$0xff]  }
 0x118   :  { %3639 = vmatpush3.bf16.msra.mxu1 %v3984_v28  ;;  %2721 = vmatprep.mubr.bf16.mxu1 %v413_v34  ;;  %v415_v28 = vpack.c.bf16 %v4473_v13, %v4473_v13  ;;  %v4025_v13 = vld [vmem:[%s5272_s3 + $0x350] sm:$0xff]   ;;  %v4027_v34 = vld [vmem:[%s5272_s3 + $0x3d8] sm:$0xff]  }
 0x119   :  { %2602 = vmatmul.mubr.bf16.vlgmr.msra.gmra.mrb[4].mxu0 %v406_v38  ;;  %3640 = vmatprep.subr.bf16.mxu1 %v3987_v33  ;;  %v4024_v33 = vld [vmem:[%s5272_s3 + $0x390] sm:$0xff]   ;;  %v4029_v38 = vld [vmem:[%s5272_s3 + $0x358] sm:$0xff]  }
 0x11a   :  { %3617 = vmatpush3.bf16.msra.mxu0 %v3986_v37  ;;  %2681 = vmatprep.mubr.bf16.mxu0 %v411_v39  ;;  %v4026_v37 = vld [vmem:[%s5272_s3 + $0x310] sm:$0xff]   ;;  %v4031_v39 = vld [vmem:[%s5272_s3 + $0x3e0] sm:$0xff]  }
 0x11b   :  { %3618 = vmatprep.subr.bf16.mxu0 %v3989_v45  ;;  %v4028_v45 = vld [vmem:[%s5272_s3 + $0x398] sm:$0xff]  }
 0x11c   :  { %3641 = vmatpush3.bf16.msra.mxu1 %v3988_v55  ;;  %v4030_v55 = vld [vmem:[%s5272_s3 + $0x318] sm:$0xff]  }
 0x11d   :  { %3642 = vmatprep.subr.bf16.mxu1 %v3991_v59  ;;  %v4033_v59 = vld [vmem:[%s5272_s3 + $0x360] sm:$0xff]  }
 0x11e   :  { %3619 = vmatpush3.bf16.msra.mxu0 %v3990_v42  ;;  %v4032_v42 = vld [vmem:[%s5272_s3 + $0x3a0] sm:$0xff]  }
 0x11f   :  { %3620 = vmatprep.subr.bf16.mxu0 %v3993_v3  ;;  %v4035_v3 = vld [vmem:[%s5272_s3 + $0x3e8] sm:$0xff]  }
 0x120   :  { %3643 = vmatpush3.bf16.msra.mxu1 %v3992_v43  ;;  %v4034_v43 = vld [vmem:[%s5272_s3 + $0x320] sm:$0xff]  }
 0x121   :  { %3644 = vmatprep.subr.bf16.mxu1 %v3995_v44  ;;  %v4037_v44 = vld [vmem:[%s5272_s3 + $0x368] sm:$0xff]  }
 0x122   :  { %3621 = vmatpush3.bf16.msra.mxu0 %v3994_v46  ;;  %v4036_v46 = vld [vmem:[%s5272_s3 + $0x3a8] sm:$0xff]  }
 0x123   :  { %3622 = vmatprep.subr.bf16.mxu0 %v3997_v47  ;;  %v4039_v47 = vld [vmem:[%s5272_s3 + $0x3f0] sm:$0xff]  }
 0x124   :  { %3645 = vmatpush3.bf16.msra.mxu1 %v3996_v48  ;;  %v4038_v48 = vld [vmem:[%s5272_s3 + $0x328] sm:$0xff]  }
 0x125   :  { %3646 = vmatprep.subr.bf16.mxu1 %v3999_v49  ;;  %v4041_v49 = vld [vmem:[%s5272_s3 + $0x370] sm:$0xff]  }
 0x126   :  { %3623 = vmatpush3.bf16.msra.mxu0 %v3998_v50  ;;  %v4040_v50 = vld [vmem:[%s5272_s3 + $0x3b0] sm:$0xff]  }
 0x127   :  { %3624 = vmatprep.subr.bf16.mxu0 %v4001_v51  ;;  %v4043_v51 = vld [vmem:[%s5272_s3 + $0x3f8] sm:$0xff]  }
 0x128   :  { %3647 = vmatpush3.bf16.msra.mxu1 %v4000_v52  ;;  %v4042_v52 = vld [vmem:[%s5272_s3 + $0x330] sm:$0xff]  }
 0x129   :  { %3648 = vmatprep.subr.bf16.mxu1 %v4003_v53  ;;  %v4045_v53 = vld [vmem:[%s5272_s3 + $0x378] sm:$0xff]  }
 0x12a   :  { %3625 = vmatpush3.bf16.msra.mxu0 %v4002_v54  ;;  %v4044_v54 = vld [vmem:[%s5272_s3 + $0x3b8] sm:$0xff]  }
 0x12b   :  { %3626 = vmatprep.subr.bf16.mxu0 %v4005_v56  ;;  %v4047_v56 = vld [vmem:[%s5272_s3 + $0x4c0] sm:$0xff]  }
 0x12c   :  { %3649 = vmatpush3.bf16.msra.mxu1 %v4004_v58  ;;  %v4046_v58 = vld [vmem:[%s5272_s3 + $0x338] sm:$0xff]  }
 0x12d   :  { %3650 = vmatprep.subr.bf16.mxu1 %v4007_v61  ;;  %v4049_v61 = vld [vmem:[%s5272_s3 + $0x440] sm:$0xff]  }
 0x12e   :  { %3627 = vmatpush3.bf16.msra.mxu0 %v4006_v63  ;;  %v4048_v63 = vld [vmem:[%s5272_s3 + $0x480] sm:$0xff]  }
 0x12f   :  { %3628 = vmatprep.subr.bf16.mxu0 %v4009_v5  ;;  %v416_v5 = vpack.c.bf16 %v4476_v14, %v4476_v14  ;;  %v4053_v14 = vld [vmem:[%s5272_s3 + $0x448] sm:$0xff]  }
 0x130   :  { %3651 = vmatpush3.bf16.msra.mxu1 %v4008_v7  ;;  %v4051_v7 = vld [vmem:[%s5272_s3 + $0x4c8] sm:$0xff]  }
 0x131   :  { %3652 = vmatprep.subr.bf16.mxu1 %v4011_v0  ;;  %v421_v0 = vpack.c.bf16 %v4480_v62, %v4480_v62  ;;  %v4052_v62 = vld [vmem:[%s5272_s3 + $0x488] sm:$0xff]  }
 0x132   :  { %3629 = vmatpush3.bf16.msra.mxu0 %v4010_v10  ;;  %v4050_v10 = vld [vmem:[%s5272_s3 + $0x400] sm:$0xff]  }
 0x133   :  { %3630 = vmatprep.subr.bf16.mxu0 %v4013_v15  ;;  %v414_v15 = vpack.c.bf16 %v4491_v19, %v4491_v19  ;;  %v4055_v19 = vld [vmem:[%s5272_s3 + $0x4d0] sm:$0xff]  }
 0x134   :  { %3653 = vmatpush3.bf16.msra.mxu1 %v4012_v16  ;;  %v419_v16 = vpack.c.bf16 %v4511_v29, %v4511_v29  ;;  %v4057_v29 = vld [vmem:[%s5272_s3 + $0x450] sm:$0xff]  }
 0x135   :  { %3682 = vmatprep.subr.bf16.mxu1 %v4015_v17  ;;  %v4054_v17 = vld [vmem:[%s5272_s3 + $0x408] sm:$0xff]  }
 0x136   :  { %3631 = vmatpush3.bf16.msra.mxu0 %v4014_v18  ;;  %v4056_v18 = vld [vmem:[%s5272_s3 + $0x490] sm:$0xff]  }
 0x137   :  { %2722 = vmatmul.mubr.bf16.vlgmr.msra.gmra.mrb[16].mxu1 %v412_v23  ;;  %3660 = vmatprep.subr.bf16.mxu0 %v4017_v20  ;;  %v4059_v20 = vld [vmem:[%s5272_s3 + $0x4d8] sm:$0xff]  }
 0x138   :  { %3683 = vmatpush3.bf16.msra.mxu1 %v4016_v22  ;;  %2801 = vmatprep.mubr.bf16.mxu1 %v417_v25  ;;  %v4058_v22 = vld [vmem:[%s5272_s3 + $0x410] sm:$0xff]   ;;  %v4061_v23 = vld [vmem:[%s5272_s3 + $0x458] sm:$0xff]   ;;  %v4063_v25 = vld [vmem:[%s5272_s3 + $0x4e0] sm:$0xff]  }
 0x139   :  { %2682 = vmatmul.mubr.bf16.vlgmr.msra.gmra.mrb[8].mxu0 %v410_v27  ;;  %3684 = vmatprep.subr.bf16.mxu1 %v4019_v24  ;;  %v4060_v24 = vld [vmem:[%s5272_s3 + $0x498] sm:$0xff]   ;;  %v4065_v27 = vld [vmem:[%s5272_s3 + $0x460] sm:$0xff]  }
 0x13a   :  { %3661 = vmatpush3.bf16.msra.mxu0 %v4018_v26  ;;  %2761 = vmatprep.mubr.bf16.mxu0 %v415_v28  ;;  %v4062_v26 = vld [vmem:[%s5272_s3 + $0x418] sm:$0xff]   ;;  %v4067_v28 = vld [vmem:[%s5272_s3 + $0x4e8] sm:$0xff]  }
 0x13b   :  { %3662 = vmatprep.subr.bf16.mxu0 %v4021_v4  ;;  %v4064_v4 = vld [vmem:[%s5272_s3 + $0x4a0] sm:$0xff]  }
 0x13c   :  { %3685 = vmatpush3.bf16.msra.mxu1 %v4020_v60  ;;  %v4066_v60 = vld [vmem:[%s5272_s3 + $0x420] sm:$0xff]  }
 0x13d   :  { %3686 = vmatprep.subr.bf16.mxu1 %v4023_v12  ;;  %v4069_v12 = vld [vmem:[%s5272_s3 + $0x468] sm:$0xff]  }
 0x13e   :  { %3663 = vmatpush3.bf16.msra.mxu0 %v4022_v32  ;;  %v4068_v32 = vld [vmem:[%s5272_s3 + $0x4a8] sm:$0xff]  }
 0x13f   :  { %3664 = vmatprep.subr.bf16.mxu0 %v4025_v13  ;;  %v4071_v13 = vld [vmem:[%s5272_s3 + $0x4f0] sm:$0xff]  }
 0x140   :  { %3687 = vmatpush3.bf16.msra.mxu1 %v4024_v33  ;;  %v4070_v33 = vld [vmem:[%s5272_s3 + $0x428] sm:$0xff]  }
 0x141   :  { %3688 = vmatprep.subr.bf16.mxu1 %v4027_v34  ;;  %v4073_v34 = vld [vmem:[%s5272_s3 + $0x470] sm:$0xff]  }
 0x142   :  { %3665 = vmatpush3.bf16.msra.mxu0 %v4026_v37  ;;  %v4072_v37 = vld [vmem:[%s5272_s3 + $0x4b0] sm:$0xff]  }
 0x143   :  { %3666 = vmatprep.subr.bf16.mxu0 %v4029_v38  ;;  %v4075_v38 = vld [vmem:[%s5272_s3 + $0x4f8] sm:$0xff]  }
 0x144   :  { %3689 = vmatpush3.bf16.msra.mxu1 %v4028_v45  ;;  %v4074_v45 = vld [vmem:[%s5272_s3 + $0x430] sm:$0xff]  }
 0x145   :  { %3690 = vmatprep.subr.bf16.mxu1 %v4031_v39  ;;  %v4077_v39 = vld [vmem:[%s5272_s3 + $0x478] sm:$0xff]  }
 0x146   :  { %3667 = vmatpush3.bf16.msra.mxu0 %v4030_v55  ;;  %v4076_v55 = vld [vmem:[%s5272_s3 + $0x4b8] sm:$0xff]  }
 0x147   :  { %3668 = vmatprep.subr.bf16.mxu0 %v4033_v59  ;;  %v4079_v59 = vld [vmem:[%s5272_s3 + $0x5c0] sm:$0xff]  }
 0x148   :  { %3691 = vmatpush3.bf16.msra.mxu1 %v4032_v42  ;;  %v4078_v42 = vld [vmem:[%s5272_s3 + $0x438] sm:$0xff]  }
 0x149   :  { %3692 = vmatprep.subr.bf16.mxu1 %v4035_v3  ;;  %v4081_v3 = vld [vmem:[%s5272_s3 + $0x540] sm:$0xff]  }
 0x14a   :  { %3669 = vmatpush3.bf16.msra.mxu0 %v4034_v43  ;;  %v4080_v43 = vld [vmem:[%s5272_s3 + $0x580] sm:$0xff]  }
 0x14b   :  { %3670 = vmatprep.subr.bf16.mxu0 %v4037_v44  ;;  %v420_v44 = vpack.c.bf16 %v4496_v21, %v4496_v21  ;;  %v4085_v21 = vld [vmem:[%s5272_s3 + $0x548] sm:$0xff]  }
 0x14c   :  { %3693 = vmatpush3.bf16.msra.mxu1 %v4036_v46  ;;  %v4083_v46 = vld [vmem:[%s5272_s3 + $0x5c8] sm:$0xff]  }
 0x14d   :  { %3694 = vmatprep.subr.bf16.mxu1 %v4039_v47  ;;  %v425_v47 = vpack.c.bf16 %v4514_v31, %v4514_v31  ;;  %v4084_v31 = vld [vmem:[%s5272_s3 + $0x588] sm:$0xff]  }
 0x14e   :  { %3671 = vmatpush3.bf16.msra.mxu0 %v4038_v48  ;;  %v4082_v48 = vld [vmem:[%s5272_s3 + $0x500] sm:$0xff]  }
 0x14f   :  { %3672 = vmatprep.subr.bf16.mxu0 %v4041_v49  ;;  %v418_v49 = vpack.c.bf16 %v4523_v35, %v4523_v35  ;;  %v4087_v35 = vld [vmem:[%s5272_s3 + $0x5d0] sm:$0xff]  }
 0x150   :  { %3695 = vmatpush3.bf16.msra.mxu1 %v4040_v50  ;;  %v423_v50 = vpack.c.bf16 %v4526_v36, %v4526_v36  ;;  %v4089_v36 = vld [vmem:[%s5272_s3 + $0x550] sm:$0xff]  }
 0x151   :  { %3696 = vmatprep.subr.bf16.mxu1 %v4043_v51  ;;  %v4086_v51 = vld [vmem:[%s5272_s3 + $0x508] sm:$0xff]  }
 0x152   :  { %3673 = vmatpush3.bf16.msra.mxu0 %v4042_v52  ;;  %v4088_v52 = vld [vmem:[%s5272_s3 + $0x590] sm:$0xff]  }
 0x153   :  { %3674 = vmatprep.subr.bf16.mxu0 %v4045_v53  ;;  %v4091_v53 = vld [vmem:[%s5272_s3 + $0x5d8] sm:$0xff]  }
 0x154   :  { %3697 = vmatpush3.bf16.msra.mxu1 %v4044_v54  ;;  %v4090_v54 = vld [vmem:[%s5272_s3 + $0x510] sm:$0xff]  }
 0x155   :  { %3726 = vmatprep.subr.bf16.mxu1 %v4047_v56  ;;  %v4093_v56 = vld [vmem:[%s5272_s3 + $0x558] sm:$0xff]  }
 0x156   :  { %3675 = vmatpush3.bf16.msra.mxu0 %v4046_v58  ;;  %v4092_v58 = vld [vmem:[%s5272_s3 + $0x598] sm:$0xff]  }
 0x157   :  { %2802 = vmatmul.mubr.bf16.vlgmr.msra.gmra.mrb[20].mxu1 %v416_v5  ;;  %3704 = vmatprep.subr.bf16.mxu0 %v4049_v61  ;;  %v4095_v61 = vld [vmem:[%s5272_s3 + $0x5e0] sm:$0xff]  }
 0x158   :  { %3727 = vmatpush3.bf16.msra.mxu1 %v4048_v63  ;;  %2881 = vmatprep.mubr.bf16.mxu1 %v421_v0  ;;  %v4094_v63 = vld [vmem:[%s5272_s3 + $0x518] sm:$0xff]   ;;  %v4097_v5 = vld [vmem:[%s5272_s3 + $0x560] sm:$0xff]   ;;  %v4099_v0 = vld [vmem:[%s5272_s3 + $0x5e8] sm:$0xff]  }
 0x159   :  { %2762 = vmatmul.mubr.bf16.vlgmr.msra.gmra.mrb[12].mxu0 %v414_v15  ;;  %3728 = vmatprep.subr.bf16.mxu1 %v4051_v7  ;;  %v4096_v7 = vld [vmem:[%s5272_s3 + $0x5a0] sm:$0xff]   ;;  %v4101_v15 = vld [vmem:[%s5272_s3 + $0x568] sm:$0xff]  }
 0x15a   :  { %3705 = vmatpush3.bf16.msra.mxu0 %v4050_v10  ;;  %2841 = vmatprep.mubr.bf16.mxu0 %v419_v16  ;;  %v4098_v10 = vld [vmem:[%s5272_s3 + $0x520] sm:$0xff]   ;;  %v4103_v16 = vld [vmem:[%s5272_s3 + $0x5f0] sm:$0xff]  }
 0x15b   :  { %3706 = vmatprep.subr.bf16.mxu0 %v4053_v14  ;;  %v4100_v14 = vld [vmem:[%s5272_s3 + $0x5a8] sm:$0xff]  }
 0x15c   :  { %3729 = vmatpush3.bf16.msra.mxu1 %v4052_v62  ;;  %v4102_v62 = vld [vmem:[%s5272_s3 + $0x528] sm:$0xff]  }
 0x15d   :  { %3730 = vmatprep.subr.bf16.mxu1 %v4055_v19  ;;  %v4105_v19 = vld [vmem:[%s5272_s3 + $0x570] sm:$0xff]  }
 0x15e   :  { %3707 = vmatpush3.bf16.msra.mxu0 %v4054_v17  ;;  %v4104_v17 = vld [vmem:[%s5272_s3 + $0x5b0] sm:$0xff]  }
 0x15f   :  { %3708 = vmatprep.subr.bf16.mxu0 %v4057_v29  ;;  %v4107_v29 = vld [vmem:[%s5272_s3 + $0x5f8] sm:$0xff]  }
 0x160   :  { %3731 = vmatpush3.bf16.msra.mxu1 %v4056_v18  ;;  %v4106_v18 = vld [vmem:[%s5272_s3 + $0x530] sm:$0xff]  }
 0x161   :  { %3732 = vmatprep.subr.bf16.mxu1 %v4059_v20  ;;  %v4109_v20 = vld [vmem:[%s5272_s3 + $0x578] sm:$0xff]  }
 0x162   :  { %3709 = vmatpush3.bf16.msra.mxu0 %v4058_v22  ;;  %v4108_v22 = vld [vmem:[%s5272_s3 + $0x5b8] sm:$0xff]  }
 0x163   :  { %3710 = vmatprep.subr.bf16.mxu0 %v4061_v23  ;;  %v4111_v23 = vld [vmem:[%s5272_s3 + $0x6c0] sm:$0xff]  }
 0x164   :  { %3733 = vmatpush3.bf16.msra.mxu1 %v4060_v24  ;;  %v4110_v24 = vld [vmem:[%s5272_s3 + $0x538] sm:$0xff]  }
 0x165   :  { %3734 = vmatprep.subr.bf16.mxu1 %v4063_v25  ;;  %v4113_v25 = vld [vmem:[%s5272_s3 + $0x640] sm:$0xff]  }
 0x166   :  { %3711 = vmatpush3.bf16.msra.mxu0 %v4062_v26  ;;  %v4112_v26 = vld [vmem:[%s5272_s3 + $0x680] sm:$0xff]  }
 0x167   :  { %3712 = vmatprep.subr.bf16.mxu0 %v4065_v27  ;;  %v424_v27 = vpack.c.bf16 %v4534_v40, %v4534_v40  ;;  %v4117_v40 = vld [vmem:[%s5272_s3 + $0x648] sm:$0xff]  }
 0x168   :  { %3735 = vmatpush3.bf16.msra.mxu1 %v4064_v4  ;;  %v4115_v4 = vld [vmem:[%s5272_s3 + $0x6c8] sm:$0xff]  }
 0x169   :  { %3736 = vmatprep.subr.bf16.mxu1 %v4067_v28  ;;  %v429_v28 = vpack.c.bf16 %v4537_v41, %v4537_v41  ;;  %v4116_v41 = vld [vmem:[%s5272_s3 + $0x688] sm:$0xff]  }
 0x16a   :  { %3713 = vmatpush3.bf16.msra.mxu0 %v4066_v60  ;;  %v4114_v60 = vld [vmem:[%s5272_s3 + $0x600] sm:$0xff]  }
 0x16b   :  { %3714 = vmatprep.subr.bf16.mxu0 %v4069_v12  ;;  %v422_v12 = vpack.c.bf16 %v4558_v57, %v4558_v57  ;;  %v4119_v57 = vld [vmem:[%s5272_s3 + $0x6d0] sm:$0xff]  }
 0x16c   :  { %3737 = vmatpush3.bf16.msra.mxu1 %v4068_v32  ;;  %v427_v32 = vpack.c.bf16 %v4561_v6, %v4561_v6  ;;  %v4121_v6 = vld [vmem:[%s5272_s3 + $0x650] sm:$0xff]  }
 0x16d   :  { %3738 = vmatprep.subr.bf16.mxu1 %v4071_v13  ;;  %v4118_v13 = vld [vmem:[%s5272_s3 + $0x608] sm:$0xff]  }
 0x16e   :  { %3715 = vmatpush3.bf16.msra.mxu0 %v4070_v33  ;;  %v4120_v33 = vld [vmem:[%s5272_s3 + $0x690] sm:$0xff]  }
 0x16f   :  { %3716 = vmatprep.subr.bf16.mxu0 %v4073_v34  ;;  %v4123_v34 = vld [vmem:[%s5272_s3 + $0x6d8] sm:$0xff]  }
 0x170   :  { %3739 = vmatpush3.bf16.msra.mxu1 %v4072_v37  ;;  %v4122_v37 = vld [vmem:[%s5272_s3 + $0x610] sm:$0xff]  }
 0x171   :  { %3740 = vmatprep.subr.bf16.mxu1 %v4075_v38  ;;  %v4125_v38 = vld [vmem:[%s5272_s3 + $0x658] sm:$0xff]  }
 0x172   :  { %3717 = vmatpush3.bf16.msra.mxu0 %v4074_v45  ;;  %v4124_v45 = vld [vmem:[%s5272_s3 + $0x698] sm:$0xff]  }
 0x173   :  { %3718 = vmatprep.subr.bf16.mxu0 %v4077_v39  ;;  %v4127_v39 = vld [vmem:[%s5272_s3 + $0x6e0] sm:$0xff]  }
 0x174   :  { %3741 = vmatpush3.bf16.msra.mxu1 %v4076_v55  ;;  %v4126_v55 = vld [vmem:[%s5272_s3 + $0x618] sm:$0xff]  }
 0x175   :  { %3770 = vmatprep.subr.bf16.mxu1 %v4079_v59  ;;  %v4129_v59 = vld [vmem:[%s5272_s3 + $0x660] sm:$0xff]  }
 0x176   :  { %3719 = vmatpush3.bf16.msra.mxu0 %v4078_v42  ;;  %v4128_v42 = vld [vmem:[%s5272_s3 + $0x6a0] sm:$0xff]  }
 0x177   :  { %2882 = vmatmul.mubr.bf16.vlgmr.msra.gmra.mrb[24].mxu1 %v420_v44  ;;  %3748 = vmatprep.subr.bf16.mxu0 %v4081_v3  ;;  %v4131_v3 = vld [vmem:[%s5272_s3 + $0x6e8] sm:$0xff]  }
 0x178   :  { %3771 = vmatpush3.bf16.msra.mxu1 %v4080_v43  ;;  %2961 = vmatprep.mubr.bf16.mxu1 %v425_v47  ;;  %v4130_v43 = vld [vmem:[%s5272_s3 + $0x620] sm:$0xff]   ;;  %v4133_v44 = vld [vmem:[%s5272_s3 + $0x668] sm:$0xff]   ;;  %v4135_v47 = vld [vmem:[%s5272_s3 + $0x6f0] sm:$0xff]  }
 0x179   :  { %2842 = vmatmul.mubr.bf16.vlgmr.msra.gmra.mrb[16].mxu0 %v418_v49  ;;  %3772 = vmatprep.subr.bf16.mxu1 %v4083_v46  ;;  %v4132_v46 = vld [vmem:[%s5272_s3 + $0x6a8] sm:$0xff]   ;;  %v4137_v49 = vld [vmem:[%s5272_s3 + $0x670] sm:$0xff]  }
 0x17a   :  { %3749 = vmatpush3.bf16.msra.mxu0 %v4082_v48  ;;  %2921 = vmatprep.mubr.bf16.mxu0 %v423_v50  ;;  %v4134_v48 = vld [vmem:[%s5272_s3 + $0x628] sm:$0xff]   ;;  %v4139_v50 = vld [vmem:[%s5272_s3 + $0x6f8] sm:$0xff]  }
 0x17b   :  { %3750 = vmatprep.subr.bf16.mxu0 %v4085_v21  ;;  %v4136_v21 = vld [vmem:[%s5272_s3 + $0x6b0] sm:$0xff]  }
 0x17c   :  { %3773 = vmatpush3.bf16.msra.mxu1 %v4084_v31  ;;  %v4138_v31 = vld [vmem:[%s5272_s3 + $0x630] sm:$0xff]  }
 0x17d   :  { %3774 = vmatprep.subr.bf16.mxu1 %v4087_v35  ;;  %v4141_v35 = vld [vmem:[%s5272_s3 + $0x678] sm:$0xff]  }
 0x17e   :  { %3751 = vmatpush3.bf16.msra.mxu0 %v4086_v51  ;;  %v4140_v51 = vld [vmem:[%s5272_s3 + $0x6b8] sm:$0xff]  }
 0x17f   :  { %3752 = vmatprep.subr.bf16.mxu0 %v4089_v36  ;;  %v4143_v36 = vld [vmem:[%s5272_s3 + $0x7c0] sm:$0xff]  }
 0x180   :  { %3775 = vmatpush3.bf16.msra.mxu1 %v4088_v52  ;;  %v4142_v52 = vld [vmem:[%s5272_s3 + $0x638] sm:$0xff]  }
 0x181   :  { %3776 = vmatprep.subr.bf16.mxu1 %v4091_v53  ;;  %v4145_v53 = vld [vmem:[%s5272_s3 + $0x740] sm:$0xff]  }
 0x182   :  { %3753 = vmatpush3.bf16.msra.mxu0 %v4090_v54  ;;  %v4144_v54 = vld [vmem:[%s5272_s3 + $0x780] sm:$0xff]  }
 0x183   :  { %3754 = vmatprep.subr.bf16.mxu0 %v4093_v56  ;;  %v428_v56 = vpack.c.bf16 %v4568_v30, %v4568_v30  ;;  %v4149_v30 = vld [vmem:[%s5272_s3 + $0x748] sm:$0xff]  }
 0x184   :  { %3777 = vmatpush3.bf16.msra.mxu1 %v4092_v58  ;;  %v4147_v58 = vld [vmem:[%s5272_s3 + $0x7c8] sm:$0xff]  }
 0x185   :  { %3778 = vmatprep.subr.bf16.mxu1 %v4095_v61  ;;  %v433_v61 = vpack.c.bf16 %v4571_v1, %v4571_v1  ;;  %v4148_v1 = vld [vmem:[%s5272_s3 + $0x788] sm:$0xff]  }
 0x186   :  { %3755 = vmatpush3.bf16.msra.mxu0 %v4094_v63  ;;  %v4146_v63 = vld [vmem:[%s5272_s3 + $0x700] sm:$0xff]  }
 0x187   :  { %3756 = vmatprep.subr.bf16.mxu0 %v4097_v5  ;;  %v426_v5 = vpack.c.bf16 %v4579_v8, %v4579_v8  ;;  %v4151_v8 = vld [vmem:[%s5272_s3 + $0x7d0] sm:$0xff]  }
 0x188   :  { %3779 = vmatpush3.bf16.msra.mxu1 %v4096_v7  ;;  %v431_v7 = vpack.c.bf16 %v4582_v9, %v4582_v9  ;;  %v4153_v9 = vld [vmem:[%s5272_s3 + $0x750] sm:$0xff]  }
 0x189   :  { %3780 = vmatprep.subr.bf16.mxu1 %v4099_v0  ;;  %v4150_v0 = vld [vmem:[%s5272_s3 + $0x708] sm:$0xff]  }
 0x18a   :  { %3757 = vmatpush3.bf16.msra.mxu0 %v4098_v10  ;;  %v4152_v10 = vld [vmem:[%s5272_s3 + $0x790] sm:$0xff]  }
 0x18b   :  { %3758 = vmatprep.subr.bf16.mxu0 %v4101_v15  ;;  %v4155_v15 = vld [vmem:[%s5272_s3 + $0x7d8] sm:$0xff]  }
 0x18c   :  { %3781 = vmatpush3.bf16.msra.mxu1 %v4100_v14  ;;  %v4154_v14 = vld [vmem:[%s5272_s3 + $0x710] sm:$0xff]  }
 0x18d   :  { %3782 = vmatprep.subr.bf16.mxu1 %v4103_v16  ;;  %v4157_v16 = vld [vmem:[%s5272_s3 + $0x758] sm:$0xff]  }
 0x18e   :  { %3759 = vmatpush3.bf16.msra.mxu0 %v4102_v62  ;;  %v4156_v62 = vld [vmem:[%s5272_s3 + $0x798] sm:$0xff]  }
 0x18f   :  { %3760 = vmatprep.subr.bf16.mxu0 %v4105_v19  ;;  %v4159_v19 = vld [vmem:[%s5272_s3 + $0x7e0] sm:$0xff]  }
 0x190   :  { %3783 = vmatpush3.bf16.msra.mxu1 %v4104_v17  ;;  %v4158_v17 = vld [vmem:[%s5272_s3 + $0x718] sm:$0xff]  }
 0x191   :  { %3784 = vmatprep.subr.bf16.mxu1 %v4107_v29  ;;  %v4161_v29 = vld [vmem:[%s5272_s3 + $0x760] sm:$0xff]  }
 0x192   :  { %3761 = vmatpush3.bf16.msra.mxu0 %v4106_v18  ;;  %v4160_v18 = vld [vmem:[%s5272_s3 + $0x7a0] sm:$0xff]  }
 0x193   :  { %3762 = vmatprep.subr.bf16.mxu0 %v4109_v20  ;;  %v4163_v20 = vld [vmem:[%s5272_s3 + $0x7e8] sm:$0xff]  }
 0x194   :  { %3785 = vmatpush3.bf16.msra.mxu1 %v4108_v22  ;;  %v4162_v22 = vld [vmem:[%s5272_s3 + $0x720] sm:$0xff]  }
 0x195   :  { %3814 = vmatprep.subr.bf16.mxu1 %v4111_v23  ;;  %v4165_v23 = vld [vmem:[%s5272_s3 + $0x768] sm:$0xff]  }
 0x196   :  { %3763 = vmatpush3.bf16.msra.mxu0 %v4110_v24  ;;  %v4164_v24 = vld [vmem:[%s5272_s3 + $0x7a8] sm:$0xff]  }
 0x197   :  { %2962 = vmatmul.mubr.bf16.vlgmr.msra.gmra.mrb[28].mxu1 %v424_v27  ;;  %3792 = vmatprep.subr.bf16.mxu0 %v4113_v25  ;;  %v4167_v25 = vld [vmem:[%s5272_s3 + $0x7f0] sm:$0xff]   ;;  %v4166_v27 = vld [vmem:[%s5272_s3 + $0x728] sm:$0xff]  }
 0x198   :  { %3815 = vmatpush3.bf16.msra.mxu1 %v4112_v26  ;;  %3041 = vmatprep.mubr.bf16.mxu1 %v429_v28  ;;  %v4169_v28 = vld [vmem:[%s5272_s3 + $0x770] sm:$0xff]  }
 0x199   :  { %2922 = vmatmul.mubr.bf16.vlgmr.msra.gmra.mrb[20].mxu0 %v422_v12  ;;  %3816 = vmatprep.subr.bf16.mxu1 %v4115_v4 }
 0x19a   :  { %3793 = vmatpush3.bf16.msra.mxu0 %v4114_v60  ;;  %3001 = vmatprep.mubr.bf16.mxu0 %v427_v32  ;;  %v4168_v32 = vld [vmem:[%s5272_s3 + $0x7b0] sm:$0xff]  }
 0x19b   :  { %3794 = vmatprep.subr.bf16.mxu0 %v4117_v40 }
 0x19c   :  { %3817 = vmatpush3.bf16.msra.mxu1 %v4116_v41  ;;  %v3265_v41 = vld [vmem:[%s5273_s4] ss:$0 sm:$0xff] }
 0x19d   :  { %3818 = vmatprep.subr.bf16.mxu1 %v4119_v57 }
 0x19e   :  { %3795 = vmatpush3.bf16.msra.mxu0 %v4118_v13 }
 0x19f   :  { %3796 = vmatprep.subr.bf16.mxu0 %v4121_v6  ;;  %v4171_v6 = vld [vmem:[%s5272_s3 + $0x7f8] sm:$0xff]  }
 0x1a0   :  { %3819 = vmatpush3.bf16.msra.mxu1 %v4120_v33 }
 0x1a1   :  { %3820 = vmatprep.subr.bf16.mxu1 %v4123_v34 }
 0x1a2   :  { %3797 = vmatpush3.bf16.msra.mxu0 %v4122_v37  ;;  %v4170_v37 = vld [vmem:[%s5272_s3 + $0x730] sm:$0xff]  }
 0x1a3   :  { %3798 = vmatprep.subr.bf16.mxu0 %v4125_v38 }
 0x1a4   :  { %3821 = vmatpush3.bf16.msra.mxu1 %v4124_v45  ;;  %v4173_v45 = vld [vmem:[%s5272_s3 + $0x778] sm:$0xff]  }
 0x1a5   :  { %3822 = vmatprep.subr.bf16.mxu1 %v4127_v39 }
 0x1a6   :  { %3799 = vmatpush3.bf16.msra.mxu0 %v4126_v55  ;;  %v4172_v55 = vld [vmem:[%s5272_s3 + $0x7b8] sm:$0xff]  }
 0x1a7   :  { %3800 = vmatprep.subr.bf16.mxu0 %v4129_v59  ;;  %v4174_v59 = vld [vmem:[%s5272_s3 + $0x738] sm:$0xff]  }
 0x1a8   :  { %3823 = vmatpush3.bf16.msra.mxu1 %v4128_v42 }
 0x1a9   :  { %3824 = vmatprep.subr.bf16.mxu1 %v4131_v3  ;;  %v432_v3 = vpack.c.bf16 %v4588_v11, %v4588_v11 }
 0x1aa   :  { %3801 = vmatpush3.bf16.msra.mxu0 %v4130_v43  ;;  %v430_v43 = vpack.c.bf16 %v4591_v2, %v4591_v2 }
 0x1ab   :  { %3802 = vmatprep.subr.bf16.mxu0 %v4133_v44 }
 0x1ac   :  { %3825 = vmatpush3.bf16.msra.mxu1 %v4132_v46 }
 0x1ad   :  { %3826 = vmatprep.subr.bf16.mxu1 %v4135_v47 }
 0x1ae   :  { %3803 = vmatpush3.bf16.msra.mxu0 %v4134_v48 }
 0x1af   :  { %3804 = vmatprep.subr.bf16.mxu0 %v4137_v49 }
 0x1b0   :  { %3827 = vmatpush3.bf16.msra.mxu1 %v4136_v21 }
 0x1b1   :  { %3828 = vmatprep.subr.bf16.mxu1 %v4139_v50 }
 0x1b2   :  { %3805 = vmatpush3.bf16.msra.mxu0 %v4138_v31 }
 0x1b3   :  { %3806 = vmatprep.subr.bf16.mxu0 %v4141_v35 }
 0x1b4   :  { %3829 = vmatpush3.bf16.msra.mxu1 %v4140_v51 }
 0x1b5   :  { %3858 = vmatprep.subr.bf16.mxu1 %v4143_v36 }
 0x1b6   :  { %3807 = vmatpush3.bf16.msra.mxu0 %v4142_v52 }
 0x1b7   :  { %3042 = vmatmul.mubr.bf16.vlgmr.msra.gmra.mrb[32].mxu1 %v428_v56  ;;  %3836 = vmatprep.subr.bf16.mxu0 %v4145_v53 }
 0x1b8   :  { %3859 = vmatpush3.bf16.msra.mxu1 %v4144_v54  ;;  %3121 = vmatprep.mubr.bf16.mxu1 %v433_v61 }
 0x1b9   :  { %3002 = vmatmul.mubr.bf16.vlgmr.msra.gmra.mrb[24].mxu0 %v426_v5  ;;  %3860 = vmatprep.subr.bf16.mxu1 %v4147_v58 }
 0x1ba   :  { %3837 = vmatpush3.bf16.msra.mxu0 %v4146_v63  ;;  %3081 = vmatprep.mubr.bf16.mxu0 %v431_v7 }
 0x1bb   :  { %3838 = vmatprep.subr.bf16.mxu0 %v4149_v30 }
 0x1bc   :  { %3861 = vmatpush3.bf16.msra.mxu1 %v4148_v1  ;;  %v4180_v1 = vmov 0.0  }
 0x1bd   :  { %3862 = vmatprep.subr.bf16.mxu1 %v4151_v8  ;;  %v4175_v8 = vld [vmem:[%s5274_s5] sm:$0xff]  }
 0x1be   :  { %3839 = vmatpush3.bf16.msra.mxu0 %v4150_v0 }
 0x1bf   :  { %3840 = vmatprep.subr.bf16.mxu0 %v4153_v9 }
 0x1c0   :  { %3863 = vmatpush3.bf16.msra.mxu1 %v4152_v10 }
 0x1c1   :  { %3864 = vmatprep.subr.bf16.mxu1 %v4155_v15 }
 0x1c2   :  { %3841 = vmatpush3.bf16.msra.mxu0 %v4154_v14 }
 0x1c3   :  { %3842 = vmatprep.subr.bf16.mxu0 %v4157_v16 }
 0x1c4   :  { %3865 = vmatpush3.bf16.msra.mxu1 %v4156_v62 }
 0x1c5   :  { %3866 = vmatprep.subr.bf16.mxu1 %v4159_v19 }
 0x1c6   :  { %3843 = vmatpush3.bf16.msra.mxu0 %v4158_v17 }
 0x1c7   :  { %3844 = vmatprep.subr.bf16.mxu0 %v4161_v29 }
 0x1c8   :  { %3867 = vmatpush3.bf16.msra.mxu1 %v4160_v18 }
 0x1c9   :  { %3868 = vmatprep.subr.bf16.mxu1 %v4163_v20 }
 0x1ca   :  { %3845 = vmatpush3.bf16.msra.mxu0 %v4162_v22  ;;  %v3566_v26 = vpop.f32.mrb[8].mxu1 }
 0x1cb   :  { %v3567_v4 = vpop.f32.mrb[9].mxu1  ;;  %3846 = vmatprep.subr.bf16.mxu0 %v4165_v23  ;;  %v4176_v23 = vld [vmem:[%s5274_s5 + $0x8] sm:$0xff]  }
 0x1cc   :  { %v3568_v60 = vadd.f32 %v3567_v4, %v3566_v26  ;;  %3869 = vmatpush3.bf16.msra.mxu1 %v4164_v24  ;;  %v3544_v12 = vpop.f32.mrb[0].mxu0  ;;  %v3569_v40 = vpop.f32.mrb[10].mxu1  ;;  %v4177_v24 = vld [vmem:[%s5274_s5 + $0x10] sm:$0xff]  }
 0x1cd   :  { %v3545_v57 = vpop.f32.mrb[1].mxu0  ;;  %v3570_v13 = vpop.f32.mrb[11].mxu1  ;;  %3870 = vmatprep.subr.bf16.mxu1 %v4167_v25  ;;  %v4178_v25 = vld [vmem:[%s5274_s5 + $0x18] sm:$0xff]  }
 0x1ce   :  { %v3546_v33 = vadd.f32 %v3545_v57, %v3544_v12  ;;  %3847 = vmatpush3.bf16.msra.mxu0 %v4166_v27  ;;  %v3547_v34 = vpop.f32.mrb[2].mxu0 }
 0x1cf   :  { %v3548_v38 = vpop.f32.mrb[3].mxu0  ;;  %3848 = vmatprep.subr.bf16.mxu0 %v4169_v28 }
 0x1d0   :  { %v2524_v39 = vadd.f32 %v3546_v33, %v3265_v41  ;;  %3871 = vmatpush3.bf16.msra.mxu1 %v4168_v32 }
 0x1d1   :  { %3872 = vmatprep.subr.bf16.mxu1 %v4171_v6 }
 0x1d2   :  { %3849 = vmatpush3.bf16.msra.mxu0 %v4170_v37  ;;  %v2564_v42 = vadd.f32 %v3568_v60, %v2524_v39 }
 0x1d3   :  { %3850 = vmatprep.subr.bf16.mxu0 %v4173_v45 }
 0x1d4   :  { %3873 = vmatpush3.bf16.msra.mxu1 %v4172_v55 }
 0x1d6   :  { %3851 = vmatpush3.bf16.msra.mxu0 %v4174_v59 }
 0x1d7   :  { %3122 = vmatmul.mubr.bf16.vlgmr.msra.gmra.mrb[36].mxu1 %v432_v3  ;;  %3885 = vmatprep.subr.bf16.mxu0 %v4180_v1 }
 0x1d9   :  { %3082 = vmatmul.mubr.bf16.vlgmr.msra.gmra.mrb[28].mxu0 %v430_v43 }
 0x1da   :  { %3886 = vmatpush3.bf16.msra.mxu0 %v4175_v8  ;;  %3893 = vmatprep.mubr.msk.bf16.mxu0 %vm4181_vm3, %v4180_v1 }
 0x1db   :  { %3887 = vmatprep.subr.bf16.mxu0 %v4180_v1 }
 0x1de   :  { %3888 = vmatpush3.bf16.msra.mxu0 %v4176_v23 }
 0x1df   :  { %3889 = vmatprep.subr.bf16.mxu0 %v4180_v1 }
 0x1e2   :  { %3890 = vmatpush3.bf16.msra.mxu0 %v4177_v24 }
 0x1e3   :  { %3891 = vmatprep.subr.bf16.mxu0 %v4180_v1 }
 0x1e6   :  { %3892 = vmatpush3.bf16.msra.mxu0 %v4178_v25 }
 0x1ea   :  { %v3610_v44 = vpop.f32.mrb[12].mxu1 }
 0x1eb   :  { %v3611_v46 = vpop.f32.mrb[13].mxu1 }
 0x1ec   :  { %v3612_v47 = vadd.f32 %v3611_v46, %v3610_v44  ;;  %v3588_v48 = vpop.f32.mrb[4].mxu0  ;;  %v3613_v49 = vpop.f32.mrb[14].mxu1 }
 0x1ed   :  { %v3589_v21 = vpop.f32.mrb[5].mxu0  ;;  %v3614_v50 = vpop.f32.mrb[15].mxu1 }
 0x1ee   :  { %v3590_v31 = vadd.f32 %v3589_v21, %v3588_v48  ;;  %v3591_v35 = vpop.f32.mrb[6].mxu0 }
 0x1ef   :  { %v3592_v51 = vpop.f32.mrb[7].mxu0 }
 0x1f0   :  { %v2604_v36 = vadd.f32 %v3590_v31, %v2564_v42 }
 0x1f2   :  { %v2644_v52 = vadd.f32 %v3612_v47, %v2604_v36 }
 0x20a   :  { %v3654_v53 = vpop.f32.mrb[16].mxu1 }
 0x20b   :  { %v3655_v11 = vpop.f32.mrb[17].mxu1 }
 0x20c   :  { %v3656_v54 = vadd.f32 %v3655_v11, %v3654_v53  ;;  %v3632_v56 = vpop.f32.mrb[8].mxu0  ;;  %v3657_v58 = vpop.f32.mrb[18].mxu1 }
 0x20d   :  { %v3633_v61 = vpop.f32.mrb[9].mxu0  ;;  %v3658_v2 = vpop.f32.mrb[19].mxu1 }
 0x20e   :  { %v3634_v63 = vadd.f32 %v3633_v61, %v3632_v56  ;;  %v3635_v5 = vpop.f32.mrb[10].mxu0 }
 0x20f   :  { %v3636_v30 = vpop.f32.mrb[11].mxu0 }
 0x210   :  { %v2684_v7 = vadd.f32 %v3634_v63, %v2644_v52 }
 0x212   :  { %v2724_v0 = vadd.f32 %v3656_v54, %v2684_v7 }
 0x22a   :  { %v3698_v9 = vpop.f32.mrb[20].mxu1 }
 0x22b   :  { %v3699_v10 = vpop.f32.mrb[21].mxu1 }
 0x22c   :  { %v3700_v15 = vadd.f32 %v3699_v10, %v3698_v9  ;;  %v3676_v14 = vpop.f32.mrb[12].mxu0  ;;  %v3701_v16 = vpop.f32.mrb[22].mxu1  ;;  %v3522_v10 = vld [vmem:[%s5275_s6] ss:$0 sm:$0xff] }
 0x22d   :  { %v3677_v62 = vpop.f32.mrb[13].mxu0  ;;  %v3702_v19 = vpop.f32.mrb[23].mxu1 }
 0x22e   :  { %v3678_v17 = vadd.f32 %v3677_v62, %v3676_v14  ;;  %v3679_v29 = vpop.f32.mrb[14].mxu0 }
 0x22f   :  { %v3680_v18 = vpop.f32.mrb[15].mxu0 }
 0x230   :  { %v2764_v20 = vadd.f32 %v3678_v17, %v2724_v0 }
 0x232   :  { %v2804_v22 = vadd.f32 %v3700_v15, %v2764_v20 }
 0x24a   :  { %v3742_v26 = vpop.f32.mrb[24].mxu1 }
 0x24b   :  { %v3743_v27 = vpop.f32.mrb[25].mxu1 }
 0x24c   :  { %v3744_v4 = vadd.f32 %v3743_v27, %v3742_v26  ;;  %v3720_v28 = vpop.f32.mrb[16].mxu0  ;;  %v3745_v60 = vpop.f32.mrb[26].mxu1 }
 0x24d   :  { %v3721_v12 = vpop.f32.mrb[17].mxu0  ;;  %v3746_v40 = vpop.f32.mrb[27].mxu1 }
 0x24e   :  { %v3722_v32 = vadd.f32 %v3721_v12, %v3720_v28  ;;  %v3723_v41 = vpop.f32.mrb[18].mxu0 }
 0x24f   :  { %v3724_v57 = vpop.f32.mrb[19].mxu0 }
 0x250   :  { %v2844_v13 = vadd.f32 %v3722_v32, %v2804_v22 }
 0x252   :  { %v2884_v6 = vadd.f32 %v3744_v4, %v2844_v13 }
 0x26a   :  { %v3786_v33 = vpop.f32.mrb[28].mxu1 }
 0x26b   :  { %v3787_v34 = vpop.f32.mrb[29].mxu1 }
 0x26c   :  { %v3788_v37 = vadd.f32 %v3787_v34, %v3786_v33  ;;  %v3764_v38 = vpop.f32.mrb[20].mxu0  ;;  %v3789_v45 = vpop.f32.mrb[30].mxu1 }
 0x26d   :  { %v3765_v39 = vpop.f32.mrb[21].mxu0  ;;  %v3790_v55 = vpop.f32.mrb[31].mxu1 }
 0x26e   :  { %v3766_v59 = vadd.f32 %v3765_v39, %v3764_v38  ;;  %v3767_v42 = vpop.f32.mrb[22].mxu0 }
 0x26f   :  { %v3768_v3 = vpop.f32.mrb[23].mxu0 }
 0x270   :  { %v2924_v43 = vadd.f32 %v3766_v59, %v2884_v6 }
 0x272   :  { %v2964_v44 = vadd.f32 %v3788_v37, %v2924_v43 }
 0x28a   :  { %v3830_v46 = vpop.f32.mrb[32].mxu1 }
 0x28b   :  { %v3831_v47 = vpop.f32.mrb[33].mxu1 }
 0x28c   :  { %v3832_v48 = vadd.f32 %v3831_v47, %v3830_v46  ;;  %v3808_v49 = vpop.f32.mrb[24].mxu0  ;;  %v3833_v21 = vpop.f32.mrb[34].mxu1 }
 0x28d   :  { %v3809_v50 = vpop.f32.mrb[25].mxu0  ;;  %v3834_v31 = vpop.f32.mrb[35].mxu1 }
 0x28e   :  { %v3810_v35 = vadd.f32 %v3809_v50, %v3808_v49  ;;  %v3811_v51 = vpop.f32.mrb[26].mxu0 }
 0x28f   :  { %v3812_v36 = vpop.f32.mrb[27].mxu0 }
 0x290   :  { %v3004_v52 = vadd.f32 %v3810_v35, %v2964_v44 }
 0x292   :  { %v3044_v53 = vadd.f32 %v3832_v48, %v3004_v52 }
 0x2aa   :  { %v3874_v11 = vpop.f32.mrb[36].mxu1 }
 0x2ab   :  { %v3875_v54 = vpop.f32.mrb[37].mxu1 }
 0x2ac   :  { %v3876_v56 = vadd.f32 %v3875_v54, %v3874_v11  ;;  %v3852_v58 = vpop.f32.mrb[28].mxu0  ;;  %v3877_v61 = vpop.f32.mrb[38].mxu1 }
 0x2ad   :  { %v3853_v2 = vpop.f32.mrb[29].mxu0  ;;  %v3878_v63 = vpop.f32.mrb[39].mxu1 }
 0x2ae   :  { %v3854_v5 = vadd.f32 %v3853_v2, %v3852_v58  ;;  %v3855_v30 = vpop.f32.mrb[30].mxu0 }
 0x2af   :  { %v3856_v7 = vpop.f32.mrb[31].mxu0 }
 0x2b0   :  { %v3084_v1 = vadd.f32 %v3854_v5, %v3044_v53 }
 0x2b2   :  { %v3124_v8 = vadd.f32 %v3876_v56, %v3084_v1 }
 0x2b4   :  { %v3129_v0 = vmax.f32 %v3124_v8, 0.0 }
 0x2b6   :  { %v3130_v9 = vpack.c.bf16 %v3129_v0, %v3129_v0 }
 0x2b8   :  { %3894 = vmatmul.mubr.msk.bf16.vlgmr.msra.gmra.mrb[32].mxu0 %vm3170_vm4, %v3130_v9 }
 0x38b   :  { %v3208_v15 = vpop.f32.mrb[32].mxu0 }
 0x38c   :  { %v3209_v14 = vadd.f32 %v3522_v10, %v3208_v15  ;;  %v3895_v16 = vpop.f32.mrb[33].mxu0 }
 0x38d   :  { %v3211_v62 = vpop.f32.mrb[34].mxu0 }
 0x38e   :  { %3215 = vrot.lane.b32.xlu1 %v3209_v14, %s4182_s27  ;;  %v3896_v19 = vpop.f32.mrb[35].mxu0 }
 0x400   :  { %v3216_v17 = vpop.permute.xlu1 %3215 }
 0x401   :  { %v3218_v29 = vsel %vm3170_vm4, %v3129_v0, %v3216_v17 }
 0x402   :  { %3219 = vst [vmem:[%s5276_s7] sm:$0x3] %v3218_v29 }

</bundles_post_ra>
